<compile_context>
chip_gen: v5e
topology: v5e:2x2
jax: 0.10.0
libtpu: 0.0.40
codegen_flags: <defaults>
</compile_context>

<pallas_src>
import functools
import math

import numpy as np
import jax
import jax.numpy as jnp
from jax.experimental import pallas as pl
from jax.experimental.pallas import tpu as pltpu

F32 = jnp.float32
BF16 = jnp.bfloat16
SQRT2 = float(np.sqrt(2.0))


def _round_up(x, m):
    return ((x + m - 1) // m) * m


@functools.lru_cache(maxsize=None)
def _vmem_capacity_bytes():
    try:
        info = pltpu.get_tpu_info()
        cap = getattr(info, "vmem_capacity_bytes", None)
        if cap:
            return int(cap)
    except Exception:
        pass
    return 64 * 1024 * 1024  # conservative default (v7x per-TC)


# ----------------------------------------------------------------------------
# Pallas kernels
# ----------------------------------------------------------------------------
def _bmm_act_kernel(x_ref, w_ref, s_ref, b_ref, a_ref, o_ref):
    """o = act((x @ w) * scale + shift); act(y) = where(y>=0, y, alpha*y)."""
    y = jnp.dot(x_ref[...], w_ref[...], preferred_element_type=jnp.float32)
    y = y * s_ref[...] + b_ref[...]
    o_ref[...] = jnp.where(y >= 0.0, y, a_ref[...] * y).astype(o_ref.dtype)


def _bmm_act_res_kernel(x_ref, w_ref, s_ref, b_ref, a_ref, r_ref, o_ref):
    """Same as above with a fused residual add after the activation."""
    y = jnp.dot(x_ref[...], w_ref[...], preferred_element_type=jnp.float32)
    y = y * s_ref[...] + b_ref[...]
    y = jnp.where(y >= 0.0, y, a_ref[...] * y) + r_ref[...].astype(jnp.float32)
    o_ref[...] = y.astype(o_ref.dtype)


def _hinterp_add_kernel(wh_ref, x_ref, y_ref, o_ref):
    """Fused align_corners height interpolation (matmul) + residual add."""
    t = jnp.dot(wh_ref[...], x_ref[...].astype(jnp.float32),
                preferred_element_type=jnp.float32)
    o_ref[...] = (t + y_ref[...].astype(jnp.float32)).astype(o_ref.dtype)


def _hinterp_kernel(wh_ref, x_ref, o_ref):
    t = jnp.dot(wh_ref[...], x_ref[...].astype(jnp.float32),
                preferred_element_type=jnp.float32)
    o_ref[...] = t.astype(o_ref.dtype)


# ----------------------------------------------------------------------------
# Grouped matmul + fused epilogue wrapper
# ----------------------------------------------------------------------------
def _choose_tm(M, K, nb):
    """Pick an M tile that divides Mp (multiple of 16 for bf16 sublanes)."""
    Mp = _round_up(max(M, 1), 16)
    budget = _vmem_capacity_bytes() // 8          # x tile, bf16, double-buffered
    cap = max(16, budget // (4 * K))
    tm = 16
    for t in (512, 256, 128, 64, 32, 16):
        if t <= cap and Mp % t == 0:
            tm = t
            break
    # Guarantee >=2 blocks on the parallel axes when possible (v7x has 2 TCs).
    if nb == 1 and Mp // tm < 2 and tm >= 32:
        tm //= 2
    return tm, Mp


def _bmm_act(x3, w3, scale3, shift3, alpha3, res3=None, out_dtype=BF16):
    """Grouped matmul + affine + PReLU/LeakyReLU (+ optional residual).

    x3:     (g, M, K) bf16, g == 1 (shared across blocks) or g == nb
    w3:     (nb, K, N) bf16 (unpadded)
    scale3/shift3/alpha3: (nb, 1, N) f32
    res3:   (nb, M(p), N) or None
    returns (nb, Mp, N) out_dtype
    """
    nb, K, N = w3.shape
    g, M, _ = x3.shape
    tm, Mp = _choose_tm(M, K, nb)
    if Mp != M:  # only for tiny M (<=16 rows); big layers divide exactly
        x3 = jnp.pad(x3, ((0, 0), (0, Mp - M), (0, 0)))
        if res3 is not None:
            res3 = jnp.pad(res3, ((0, 0), (0, Mp - M), (0, 0)))
    m_tiles = Mp // tm
    share_x = (g == 1) and (nb > 1)

    x_blk = (None, tm, K)
    w_blk = (None, K, N)
    v_blk = (None, 1, N)
    o_blk = (None, tm, N)

    out_bytes = np.dtype(out_dtype).itemsize
    est = (2 * tm * K * 2 + 2 * K * N * 2 + 2 * tm * N * out_bytes
           + (2 * tm * N * 2 if res3 is not None else 0) + 6 * N * 4)
    ceiling = max(48 * 1024 * 1024, (_vmem_capacity_bytes() * 3) // 4)
    vmem_limit = int(min(max(32 * 1024 * 1024, 2 * est + (4 << 20)), ceiling))

    if share_x:
        assert res3 is None
        # M tiles outer / block inner: the shared patch tile keeps the same
        # block index across the inner nb steps, so it is DMA'd once per tile.
        grid = (m_tiles, nb)
        in_specs = [
            pl.BlockSpec(x_blk, lambda i, n: (0, i, 0)),
            pl.BlockSpec(w_blk, lambda i, n: (n, 0, 0)),
            pl.BlockSpec(v_blk, lambda i, n: (n, 0, 0)),
            pl.BlockSpec(v_blk, lambda i, n: (n, 0, 0)),
            pl.BlockSpec(v_blk, lambda i, n: (n, 0, 0)),
        ]
        out_specs = pl.BlockSpec(o_blk, lambda i, n: (n, i, 0))
        args = [x3, w3, scale3, shift3, alpha3]
        kernel = _bmm_act_kernel
    else:
        grid = (nb, m_tiles)
        if g == nb:
            x_map = lambda n, i: (n, i, 0)
        else:
            x_map = lambda n, i: (0, i, 0)
        in_specs = [
            pl.BlockSpec(x_blk, x_map),
            pl.BlockSpec(w_blk, lambda n, i: (n, 0, 0)),
            pl.BlockSpec(v_blk, lambda n, i: (n, 0, 0)),
            pl.BlockSpec(v_blk, lambda n, i: (n, 0, 0)),
            pl.BlockSpec(v_blk, lambda n, i: (n, 0, 0)),
        ]
        args = [x3, w3, scale3, shift3, alpha3]
        kernel = _bmm_act_kernel
        if res3 is not None:
            in_specs.append(pl.BlockSpec(o_blk, lambda n, i: (n, i, 0)))
            args.append(res3)
            kernel = _bmm_act_res_kernel
        out_specs = pl.BlockSpec(o_blk, lambda n, i: (n, i, 0))

    return pl.pallas_call(
        kernel,
        out_shape=jax.ShapeDtypeStruct((nb, Mp, N), out_dtype),
        grid=grid,
        in_specs=in_specs,
        out_specs=out_specs,
        compiler_params=pltpu.CompilerParams(
            dimension_semantics=("parallel", "parallel"),
            vmem_limit_bytes=vmem_limit),
    )(*args)


# ----------------------------------------------------------------------------
# Convolution glue (im2col in XLA, matmul + epilogue in Pallas)
# ----------------------------------------------------------------------------
def _im2col(x5, stride, ksize, pre_scale=None, pre_shift=None):
    """x5: (g, B, H, W, Cin) -> (g, B*Hout*Wout, k*k*Cin) bf16 patches (no pad)."""
    g, B, H, W, Cin = x5.shape
    if pre_scale is not None:
        # bn1 affine fused into the im2col producer (applied before zero-pad).
        x5 = x5 * pre_scale + pre_shift
    x5 = x5.astype(BF16)
    Hout = (H - 1) // stride + 1
    Wout = (W - 1) // stride + 1
    if ksize == 3:
        xp = jnp.pad(x5, ((0, 0), (0, 0), (1, 1), (1, 1), (0, 0)))
        cols = []
        for i in range(3):
            for j in range(3):
                cols.append(xp[:, :, i:i + stride * (Hout - 1) + 1:stride,
                               j:j + stride * (Wout - 1) + 1:stride, :])
        patches = jnp.concatenate(cols, axis=-1)
    else:  # 1x1 conv
        patches = x5[:, :, ::stride, ::stride, :]
    return patches.reshape(g, B * Hout * Wout, ksize * ksize * Cin), Hout, Wout


@functools.partial(jax.jit, static_argnames=("stride", "ksize"))
def _conv_call(x5, w3, scale3, shift3, alpha3, pre_scale, pre_shift, residual,
               *, stride, ksize):
    nb, K, N = w3.shape
    g, B = x5.shape[0], x5.shape[1]
    patches, Hout, Wout = _im2col(x5, stride, ksize, pre_scale, pre_shift)
    M = patches.shape[1]
    res3 = residual.reshape(nb, M, N) if residual is not None else None
    out = _bmm_act(patches, w3, scale3, shift3, alpha3, res3)
    return out[:, :M, :].reshape(nb, B, Hout, Wout, N)


def conv_single(x4, cp, pre_scale=None, pre_shift=None, residual=None):
    res = None if residual is None else residual[None]
    out = _conv_call(x4[None], cp['w'], cp['scale'], cp['shift'], cp['alpha'],
                     pre_scale, pre_shift, res,
                     stride=cp['stride'], ksize=cp['ksize'])
    return out[0]


def conv_group(x5, cp):
    return _conv_call(x5, cp['w'], cp['scale'], cp['shift'], cp['alpha'],
                      None, None, None,
                      stride=cp['stride'], ksize=cp['ksize'])


@jax.jit
def _linear_all(h3, lin_w, lin_scale, lin_shift, lin_alpha):
    out = _bmm_act(h3.astype(BF16), lin_w, lin_scale, lin_shift, lin_alpha,
                   out_dtype=F32)
    return out[:, :h3.shape[1], :]


# ----------------------------------------------------------------------------
# Fused bilinear upsample (+ add)
# ----------------------------------------------------------------------------
def _bilinear_idx(n_in, n_out):
    if n_out == 1:
        src = np.zeros((1,), np.float64)
    else:
        src = np.arange(n_out, dtype=np.float64) * (n_in - 1) / (n_out - 1)
    i0 = np.clip(np.floor(src).astype(np.int64), 0, n_in - 1)
    i1 = np.minimum(i0 + 1, n_in - 1)
    frac = (src - i0).astype(np.float32)
    return i0, i1, frac


def _interp_matrix(n_in, n_out):
    i0, i1, f = _bilinear_idx(n_in, n_out)
    m = np.zeros((n_out, n_in), np.float32)
    np.add.at(m, (np.arange(n_out), i0), 1.0 - f)
    np.add.at(m, (np.arange(n_out), i1), f)
    return m


def _fused_bilinear(x, Hy, Wy, y=None, out_dtype=BF16):
    """align_corners=True bilinear resize of x to (Hy, Wy), optionally + y.

    Width (small-side) expansion runs as an XLA einsum; the height (large-side)
    expansion, the residual add and the bf16 cast are fused in one lane-dense
    Pallas matmul kernel gridded over (batch, tiles of the fused Wy*C axis).
    """
    B, Hx, Wx, C = x.shape
    wh = jnp.asarray(_interp_matrix(Hx, Hy))                 # (Hy, Hx) f32
    ww = jnp.asarray(_interp_matrix(Wx, Wy))                 # (Wy, Wx) f32
    xw = jnp.einsum('ow,bhwc->bhoc', ww, x.astype(F32))      # (B, Hx, Wy, C)
    xw = xw.astype(BF16).reshape(B, Hx, Wy * C)
    nwc = Wy * C
    tn = nwc
    for t in (4096, 2048, 1024, 512, 256, 128):
        if nwc % t == 0:
            tn = t
            break
    grid = (B, nwc // tn)
    in_specs = [
        pl.BlockSpec((Hy, Hx), lambda b, j: (0, 0)),
        pl.BlockSpec((None, Hx, tn), lambda b, j: (b, 0, j)),
    ]
    args = [wh, xw]
    if y is None:
        kernel = _hinterp_kernel
    else:
        kernel = _hinterp_add_kernel
        in_specs.append(pl.BlockSpec((None, Hy, tn), lambda b, j: (b, 0, j)))
        args.append(y.reshape(B, Hy, Wy * C))
    out = pl.pallas_call(
        kernel,
        out_shape=jax.ShapeDtypeStruct((B, Hy, nwc), out_dtype),
        grid=grid,
        in_specs=in_specs,
        out_specs=pl.BlockSpec((None, Hy, tn), lambda b, j: (b, 0, j)),
        compiler_params=pltpu.CompilerParams(
            dimension_semantics=("parallel", "parallel")),
    )(*args)
    return out.reshape(B, Hy, Wy, C)


@jax.jit
def upsample_add(x, y):
    """F.interpolate(x, size=y.spatial, bilinear, align_corners=True) + y."""
    return _fused_bilinear(x, y.shape[1], y.shape[2], y=y)


@jax.jit
def bilinear_upsample_x2(x):
    return _fused_bilinear(x, 2 * x.shape[1], 2 * x.shape[2])


def pixel_shuffle_packed(x, r, nb):
    """PixelShuffle(r) applied independently to nb block-major channel groups."""
    B, H, W, ctot = x.shape
    c4 = ctot // nb
    c = c4 // (r * r)
    x = x.reshape(B, H, W, nb, c, r, r)
    x = jnp.transpose(x, (0, 1, 5, 2, 6, 3, 4))
    return x.reshape(B, H * r, W * r, nb * c)


# ----------------------------------------------------------------------------
# Deterministic synthetic parameter construction (bf16 weights, unpadded)
# ----------------------------------------------------------------------------
def he_conv_np(rng, cin, cout, k):
    fan_in = cin * k * k
    w = rng.standard_normal((cout, cin, k, k), dtype=np.float32) * np.float32(
        np.sqrt(2.0 / fan_in))
    # (Cout, Cin, kh, kw) -> (kh, kw, Cin, Cout) -> (kh*kw*Cin, Cout)
    return np.ascontiguousarray(
        np.transpose(w, (2, 3, 1, 0)).reshape(k * k * cin, cout))


def bn_fold_np(rng, c, eps=1e-5):
    gamma = (1.0 + 0.1 * rng.standard_normal(c)).astype(np.float32)
    beta = (0.1 * rng.standard_normal(c)).astype(np.float32)
    mean = np.zeros(c, np.float32)
    var = np.ones(c, np.float32)
    scale = gamma / np.sqrt(var + eps)
    shift = beta - mean * scale
    return scale.astype(np.float32), shift.astype(np.float32)


def _finish_pack(w, sc, sh, al, stride, ksize):
    return dict(w=jnp.asarray(w, BF16), scale=jnp.asarray(sc, F32),
                shift=jnp.asarray(sh, F32), alpha=jnp.asarray(al, F32),
                stride=int(stride), ksize=int(ksize))


def _pack_group(entries, stride, ksize):
    """Stack same-shaped (w, scale, shift, alpha) entries along a leading nb axis."""
    w = np.stack([e[0] for e in entries]).astype(np.float32)
    sc = np.stack([e[1][None, :] for e in entries]).astype(np.float32)
    sh = np.stack([e[2][None, :] for e in entries]).astype(np.float32)
    al = np.stack([e[3][None, :] for e in entries]).astype(np.float32)
    return _finish_pack(w, sc, sh, al, stride, ksize)


def _pack(w_np, scale, shift, alpha, stride, ksize):
    return _pack_group([(w_np, scale, shift, alpha)], stride, ksize)


def _pack_concat_n(entries, stride, ksize):
    """Blocks share the same input: concatenate their outputs along N (lane-dense)."""
    w = np.concatenate([e[0] for e in entries], axis=1).astype(np.float32)
    sc = np.concatenate([e[1] for e in entries])[None, :].astype(np.float32)
    sh = np.concatenate([e[2] for e in entries])[None, :].astype(np.float32)
    al = np.concatenate([e[3] for e in entries])[None, :].astype(np.float32)
    return _finish_pack(w[None], sc[None], sh[None], al[None], stride, ksize)


def _pack_blockdiag(entries, cins, stride, ksize):
    """Per-block inputs are channel-packed; per-tap block-diagonal weights."""
    k2 = ksize * ksize
    cin_tot = int(sum(cins))
    ns = [e[0].shape[1] for e in entries]
    n_tot = int(sum(ns))
    w = np.zeros((k2 * cin_tot, n_tot), np.float32)
    sc = np.zeros((1, n_tot), np.float32)
    sh = np.zeros((1, n_tot), np.float32)
    al = np.ones((1, n_tot), np.float32)
    coff = noff = 0
    for (wb, s, t, a), cb, nb_ in zip(entries, cins, ns):
        for tap in range(k2):
            w[tap * cin_tot + coff: tap * cin_tot + coff + cb,
              noff:noff + nb_] = wb[tap * cb:(tap + 1) * cb, :]
        sc[0, noff:noff + nb_] = s
        sh[0, noff:noff + nb_] = t
        al[0, noff:noff + nb_] = a
        coff += cb
        noff += nb_
    return _finish_pack(w[None], sc[None], sh[None], al[None], stride, ksize)


def get_blocks_50():
    cfg = [(64, 64, 3), (64, 128, 4), (128, 256, 14), (256, 512, 3)]
    units = []
    for in_c, depth, n in cfg:
        units.append((in_c, depth, 2))
        for _ in range(n - 1):
            units.append((depth, depth, 1))
    return units


def make_bottleneck(rng, in_c, depth, stride):
    bn1_s, bn1_sh = bn_fold_np(rng, in_c)
    prelu = (0.25 + 0.01 * rng.standard_normal(depth)).astype(np.float32)
    conv1 = _pack(he_conv_np(rng, in_c, depth, 3), np.ones(depth, np.float32),
                  np.zeros(depth, np.float32), prelu, 1, 3)
    bn2_s, bn2_sh = bn_fold_np(rng, depth)
    conv2 = _pack(he_conv_np(rng, depth, depth, 3), bn2_s, bn2_sh,
                  np.ones(depth, np.float32), stride, 3)
    if in_c == depth:
        shortcut = None  # MaxPool2d(1, stride)
    else:
        sc_s, sc_sh = bn_fold_np(rng, depth)
        shortcut = _pack(he_conv_np(rng, in_c, depth, 1), sc_s, sc_sh,
                         np.ones(depth, np.float32), stride, 1)
    return dict(bn1_scale=jnp.asarray(bn1_s), bn1_shift=jnp.asarray(bn1_sh),
                conv1=conv1, conv2=conv2, shortcut=shortcut, stride=int(stride))


def make_style_group(rng, n_blocks, in_c, out_c, spatial):
    num_pools = int(np.log2(spatial))
    per_block_convs = []
    per_block_lin = []
    for _ in range(n_blocks):
        layers = []
        cin = in_c
        for _ in range(num_pools):
            b = (0.02 * rng.standard_normal(out_c)).astype(np.float32)
            layers.append((he_conv_np(rng, cin, out_c, 3),
                           np.ones(out_c, np.float32), b,
                           np.full(out_c, 0.01, np.float32)))  # LeakyReLU(0.01)
            cin = out_c
        # EqualLinear(out_c, out_c, lr_mul=1): W*(1/sqrt(in)), bias=0
        lin_w = rng.standard_normal((out_c, out_c), dtype=np.float32) * np.float32(
            1.0 / np.sqrt(out_c))
        per_block_convs.append(layers)
        per_block_lin.append(np.ascontiguousarray(lin_w.T))
    convs = [_pack_group([blk[li] for blk in per_block_convs], 2, 3)
             for li in range(num_pools)]
    return dict(convs=convs, lin_w_np=np.stack(per_block_lin, axis=0),
                out_c=int(out_c), nb=int(n_blocks))


def make_content_group(rng, n_blocks, in_c, out_c, num_pools, mid_c=64,
                       num_layer=4, upsample=0):
    assert n_blocks == 2
    per_block_layers, per_block_ups, strides = [], [], []
    for b in range(n_blocks):
        layers, ups = [], []
        ic, mc, pools = in_c, mid_c, num_pools
        for i in range(num_layer):
            if pools > 0:
                pools -= 1
                stride = 2
            else:
                stride = 1
            if i > 0:
                ic = mc
            if i == num_layer - 1:
                mc = out_c
            conv_b = (0.02 * rng.standard_normal(mc)).astype(np.float32)
            fused_b = (0.02 * rng.standard_normal(mc)).astype(np.float32)
            # Conv(+bias) -> FusedLeakyReLU(bias, slope 0.2, scale sqrt(2)) folded.
            layers.append((he_conv_np(rng, ic, mc, 3),
                           np.full(mc, SQRT2, np.float32),
                           (SQRT2 * (conv_b + fused_b)).astype(np.float32),
                           np.full(mc, 0.2, np.float32), ic))
            if b == 0:
                strides.append(stride)
        for _ in range(upsample // 2):
            ub = (0.02 * rng.standard_normal(4 * mc)).astype(np.float32)
            ups.append((he_conv_np(rng, mc, 4 * mc, 3),
                        np.ones(4 * mc, np.float32), ub,
                        np.ones(4 * mc, np.float32), mc))
        per_block_layers.append(layers)
        per_block_ups.append(ups)
    convs = []
    for li in range(num_layer):
        ents = [per_block_layers[b][li] for b in range(n_blocks)]
        if li == 0:  # shared input: concat the two blocks along N (64+64 -> 128 lanes)
            convs.append(_pack_concat_n([e[:4] for e in ents], strides[li], 3))
        else:        # channel-packed inputs: per-tap block-diagonal weights
            convs.append(_pack_blockdiag([e[:4] for e in ents],
                                         [e[4] for e in ents], strides[li], 3))
    ups = []
    for li in range(upsample // 2):
        ents = [per_block_ups[b][li] for b in range(n_blocks)]
        ups.append(_pack_blockdiag([e[:4] for e in ents],
                                   [e[4] for e in ents], 1, 3))
    return dict(convs=convs, ups=ups, nb=int(n_blocks), out_c=int(out_c))


def build_encoder_params(seed=0, stylegan_size=1024):
    rng = np.random.default_rng(seed)
    P = {}
    bn_s, bn_sh = bn_fold_np(rng, 64)
    prelu = (0.25 + 0.01 * rng.standard_normal(64)).astype(np.float32)
    P['input_layer'] = _pack(he_conv_np(rng, 3, 64, 3), bn_s, bn_sh, prelu, 1, 3)
    P['body'] = [make_bottleneck(rng, a, d, s) for (a, d, s) in get_blocks_50()]
    log_size = int(math.log(stylegan_size, 2))
    P['style_count'] = 2 * log_size - 2
    P['coarse_ind'] = 3
    P['middle_ind'] = 7
    n_coarse = P['coarse_ind']
    n_middle = P['middle_ind'] - P['coarse_ind']
    n_fine = P['style_count'] - P['middle_ind']
    # styles 0..2 (spatial 16), 3..6 (spatial 32), 7..17 (spatial 64)
    P['style_groups'] = [
        make_style_group(rng, n_coarse, 512, 512, 16),
        make_style_group(rng, n_middle, 512, 512, 32),
        make_style_group(rng, n_fine, 512, 512, 64),
    ]
    nall = P['style_count']
    lin_w = np.concatenate([g['lin_w_np'] for g in P['style_groups']], axis=0)
    P['style_lin'] = dict(
        w=jnp.asarray(lin_w, BF16),
        scale=jnp.ones((nall, 1, 512), F32),
        shift=jnp.zeros((nall, 1, 512), F32),
        alpha=jnp.ones((nall, 1, 512), F32))
    # content heads, grouped in pairs that share (input feature, config)
    content_cfg = [(2, 512, 512, 2, 0), (2, 512, 512, 1, 0), (2, 512, 512, 0, 0),
                   (2, 512, 512, 0, 0), (2, 512, 512, 0, 0), (2, 512, 256, 0, 0),
                   (2, 512, 128, 0, 0), (2, 512, 64, 0, 2), (2, 512, 32, 0, 4)]
    P['content_groups'] = [make_content_group(rng, n, ic, oc, pools, upsample=up)
                           for (n, ic, oc, pools, up) in content_cfg]

    def lat(cin):
        b = (0.02 * rng.standard_normal(512)).astype(np.float32)
        return _pack(he_conv_np(rng, cin, 512, 1), np.ones(512, np.float32), b,
                     np.ones(512, np.float32), 1, 1)

    P['latlayer1'] = lat(256)
    P['latlayer2'] = lat(128)
    P['latlayer3'] = lat(64)
    P['latlayer4'] = lat(64)
    return P


# ----------------------------------------------------------------------------
# Forward passes
# ----------------------------------------------------------------------------
def bottleneck_fwd(p, x):
    if p['shortcut'] is None:
        s = x if p['stride'] == 1 else x[:, ::p['stride'], ::p['stride'], :]
    else:
        s = conv_single(x, p['shortcut'])
    # bn1 affine fused into conv1's im2col; residual add fused into conv2's epilogue.
    r = conv_single(x, p['conv1'], pre_scale=p['bn1_scale'], pre_shift=p['bn1_shift'])
    r = conv_single(r, p['conv2'], residual=s)
    return r


def style_features(grp, x):
    h = x[None]
    for cp in grp['convs']:
        h = conv_group(h, cp)
    return h.reshape(grp['nb'], x.shape[0], grp['out_c'])  # final spatial is 1x1


def content_group_fwd(grp, x):
    h = x  # single packed tensor: both blocks travel lane-dense
    for cp in grp['convs']:
        h = conv_single(h, cp)
    for cp in grp['ups']:
        h = conv_single(h, cp)
        h = pixel_shuffle_packed(h, 2, grp['nb'])
    return h


def encoder_forward(P, x_nchw):
    x = jnp.transpose(x_nchw, (0, 2, 3, 1)).astype(BF16)  # NCHW -> NHWC bf16
    x = conv_single(x, P['input_layer'])

    c0 = c1 = c2 = c3 = None
    for i, bp in enumerate(P['body']):
        x = bottleneck_fwd(bp, x)
        if i == 2:
            c0 = x
        if i == 6:
            c1 = x
        elif i == 20:
            c2 = x
        elif i == 23:
            c3 = x

    # FPN-style lateral features (align_corners bilinear upsample fused with +).
    p2 = upsample_add(c3, conv_single(c2, P['latlayer1']))
    p1 = upsample_add(p2, conv_single(c1, P['latlayer2']))

    # Style heads: grouped conv stacks + one single grouped EqualLinear call.
    hA = style_features(P['style_groups'][0], c3)   # styles 0..2
    hB = style_features(P['style_groups'][1], p2)   # styles 3..6
    hC = style_features(P['style_groups'][2], p1)   # styles 7..17
    h_all = jnp.concatenate([hA, hB, hC], axis=0)   # (style_count, B, 512)
    lat = _linear_all(h_all, P['style_lin']['w'], P['style_lin']['scale'],
                      P['style_lin']['shift'], P['style_lin']['alpha'])
    w0 = lat[0]                                      # style 0 output is the base w0
    w = jnp.concatenate([w0[None], w0[None] + lat[1:]], axis=0)
    w = jnp.transpose(w, (1, 0, 2))                  # (B, style_count, 512)

    p0 = upsample_add(p1, conv_single(c0, P['latlayer3']))
    c00 = bilinear_upsample_x2(c0)
    p00 = upsample_add(p0, conv_single(c00, P['latlayer4']))

    group_feats = [c3, c3, c3, p2, p1, p0, p00, p00, p00]
    latents2D = []
    for grp, feat in zip(P['content_groups'], group_feats):
        out = content_group_fwd(grp, feat)           # (B, Hc, Wc, 2*out_c) packed
        oc = grp['out_c']
        for b in range(grp['nb']):
            lat2d = out[..., b * oc:(b + 1) * oc]
            latents2D.append(jnp.transpose(lat2d, (0, 3, 1, 2)).astype(F32))
    return w, latents2D


# ----------------------------------------------------------------------------
# Main
# ----------------------------------------------------------------------------
if __name__ == "__main__":
    params = build_encoder_params(seed=0, stylegan_size=1024)

    key = jax.random.PRNGKey(0)
    # small input consistent with the module (RGB image, NCHW)
    x = jax.random.normal(key, (2, 3, 32, 32), dtype=jnp.float32)

    w, latents2D = encoder_forward(params, x)
    w = jax.block_until_ready(w)
    latents2D = [jax.block_until_ready(t) for t in latents2D]

    assert w.shape == (2, params['style_count'], 512)
    assert len(latents2D) == params['style_count']
    ok = bool(jnp.isfinite(w).all())
    for t in latents2D:
        ok = ok and bool(jnp.isfinite(t).all())
    assert ok
    print("KERNEL_OK")
</pallas_src>

<mosaic_0001>
module attributes {stable_mosaic.version = 11 : i64} {
  func.func @_bmm_act_kernel(%arg0: i32, %arg1: i32, %arg2: memref<1x512x27xbf16, #tpu.memory_space<vmem>>, %arg3: memref<1x27x64xbf16, #tpu.memory_space<vmem>>, %arg4: memref<1x1x64xf32, #tpu.memory_space<vmem>>, %arg5: memref<1x1x64xf32, #tpu.memory_space<vmem>>, %arg6: memref<1x1x64xf32, #tpu.memory_space<vmem>>, %arg7: memref<1x512x64xbf16, #tpu.memory_space<vmem>>) attributes {dimension_semantics = [#tpu.dimension_semantics<parallel>, #tpu.dimension_semantics<parallel>], iteration_bounds = array<i64: 1, 4>, scalar_prefetch = 0 : i64, scratch_operands = 0 : i64, tpu.core_type = #tpu.core_type<tc>, window_params = [{transform_indices = @transform_0, window_bounds = array<i64: 1, 512, 27>}, {transform_indices = @transform_1, window_bounds = array<i64: 1, 27, 64>}, {transform_indices = @transform_2, window_bounds = array<i64: 1, 1, 64>}, {transform_indices = @transform_3, window_bounds = array<i64: 1, 1, 64>}, {transform_indices = @transform_4, window_bounds = array<i64: 1, 1, 64>}, {transform_indices = @transform_5, window_bounds = array<i64: 1, 512, 64>}]} {
    %c0 = arith.constant 0 : index
    %c0_0 = arith.constant 0 : index
    %c0_1 = arith.constant 0 : index
    %0 = vector.load %arg2[%c0, %c0_0, %c0_1] : memref<1x512x27xbf16, #tpu.memory_space<vmem>>, vector<1x512x27xbf16>
    %1 = vector.shape_cast %0 : vector<1x512x27xbf16> to vector<512x27xbf16>
    %c0_2 = arith.constant 0 : index
    %c0_3 = arith.constant 0 : index
    %c0_4 = arith.constant 0 : index
    %2 = vector.load %arg3[%c0_2, %c0_3, %c0_4] : memref<1x27x64xbf16, #tpu.memory_space<vmem>>, vector<1x27x64xbf16>
    %3 = vector.shape_cast %2 : vector<1x27x64xbf16> to vector<27x64xbf16>
    %cst = arith.constant dense<0.000000e+00> : vector<512x64xf32>
    %4 = tpu.matmul %1, %3, %cst {dimension_numbers = #tpu.dot_dimension_numbers<[1], [0], [0], [1], [0, 0, 1, 1], [], []>} : vector<512x27xbf16>, vector<27x64xbf16>, vector<512x64xf32> -> vector<512x64xf32>
    %c0_5 = arith.constant 0 : index
    %c0_6 = arith.constant 0 : index
    %c0_7 = arith.constant 0 : index
    %5 = vector.load %arg4[%c0_5, %c0_6, %c0_7] : memref<1x1x64xf32, #tpu.memory_space<vmem>>, vector<1x1x64xf32>
    %6 = vector.shape_cast %5 : vector<1x1x64xf32> to vector<1x64xf32>
    %7 = vector.broadcast %6 : vector<1x64xf32> to vector<512x64xf32>
    %8 = arith.mulf %4, %7 : vector<512x64xf32>
    %c0_8 = arith.constant 0 : index
    %c0_9 = arith.constant 0 : index
    %c0_10 = arith.constant 0 : index
    %9 = vector.load %arg5[%c0_8, %c0_9, %c0_10] : memref<1x1x64xf32, #tpu.memory_space<vmem>>, vector<1x1x64xf32>
    %10 = vector.shape_cast %9 : vector<1x1x64xf32> to vector<1x64xf32>
    %11 = vector.broadcast %10 : vector<1x64xf32> to vector<512x64xf32>
    %12 = arith.addf %8, %11 : vector<512x64xf32>
    %cst_11 = arith.constant 0.000000e+00 : f32
    %13 = vector.broadcast %cst_11 : f32 to vector<512x64xf32>
    %14 = arith.cmpf oge, %12, %13 : vector<512x64xf32>
    %c0_12 = arith.constant 0 : index
    %c0_13 = arith.constant 0 : index
    %c0_14 = arith.constant 0 : index
    %15 = vector.load %arg6[%c0_12, %c0_13, %c0_14] : memref<1x1x64xf32, #tpu.memory_space<vmem>>, vector<1x1x64xf32>
    %16 = vector.shape_cast %15 : vector<1x1x64xf32> to vector<1x64xf32>
    %17 = vector.broadcast %16 : vector<1x64xf32> to vector<512x64xf32>
    %18 = arith.mulf %17, %12 : vector<512x64xf32>
    %19 = arith.select %14, %12, %18 : vector<512x64xi1>, vector<512x64xf32>
    %20 = arith.truncf %19 : vector<512x64xf32> to vector<512x64xbf16>
    %c0_15 = arith.constant 0 : index
    %c0_16 = arith.constant 0 : index
    %c0_17 = arith.constant 0 : index
    %21 = vector.load %arg7[%c0_15, %c0_16, %c0_17] : memref<1x512x64xbf16, #tpu.memory_space<vmem>>, vector<1x512x64xbf16>
    %22 = vector.shape_cast %21 : vector<1x512x64xbf16> to vector<512x64xbf16>
    %23 = vector.shape_cast %20 : vector<512x64xbf16> to vector<1x512x64xbf16>
    tpu.vector_store %arg7[%c0_15, %c0_16, %c0_17], %23 {strides = array<i32>} : memref<1x512x64xbf16, #tpu.memory_space<vmem>>, vector<1x512x64xbf16>,
    return
  }
  func.func @transform_0(%arg0: i32, %arg1: i32) -> (i32, i32, i32) {
    %c0_i32 = arith.constant 0 : i32
    %c0_i32_0 = arith.constant 0 : i32
    return %arg0, %arg1, %c0_i32 : i32, i32, i32
  }
  func.func @transform_1(%arg0: i32, %arg1: i32) -> (i32, i32, i32) {
    %c0_i32 = arith.constant 0 : i32
    %c0_i32_0 = arith.constant 0 : i32
    %c0_i32_1 = arith.constant 0 : i32
    return %arg0, %c0_i32, %c0_i32_0 : i32, i32, i32
  }
  func.func @transform_2(%arg0: i32, %arg1: i32) -> (i32, i32, i32) {
    %c0_i32 = arith.constant 0 : i32
    %c0_i32_0 = arith.constant 0 : i32
    %c0_i32_1 = arith.constant 0 : i32
    return %arg0, %c0_i32, %c0_i32_0 : i32, i32, i32
  }
  func.func @transform_3(%arg0: i32, %arg1: i32) -> (i32, i32, i32) {
    %c0_i32 = arith.constant 0 : i32
    %c0_i32_0 = arith.constant 0 : i32
    %c0_i32_1 = arith.constant 0 : i32
    return %arg0, %c0_i32, %c0_i32_0 : i32, i32, i32
  }
  func.func @transform_4(%arg0: i32, %arg1: i32) -> (i32, i32, i32) {
    %c0_i32 = arith.constant 0 : i32
    %c0_i32_0 = arith.constant 0 : i32
    %c0_i32_1 = arith.constant 0 : i32
    return %arg0, %c0_i32, %c0_i32_0 : i32, i32, i32
  }
  func.func @transform_5(%arg0: i32, %arg1: i32) -> (i32, i32, i32) {
    %c0_i32 = arith.constant 0 : i32
    %c0_i32_0 = arith.constant 0 : i32
    return %arg0, %arg1, %c0_i32 : i32, i32, i32
  }
}

</mosaic_0001>

<bundles_post_ra>
// kernel: _conv_call.1
= control target key start
LH: loop header
LB: loop body
LE: loop exit
PB: predicated region body
PF: predicated region fallthrough
CT: control target
= control target key end

     0   :  { %10 = vsyncpa [#allocation3], 0  ;;  %s2351_s0 = inlined_call_operand.vmem [shape: bf16[1,2048,27], index: 0, kind: input, shape index: {}]   ;;  %s2352_s1 = inlined_call_operand.vmem [shape: bf16[1,27,64], index: 1, kind: input, shape index: {}]   ;;  %s2353_s2 = inlined_call_operand.vmem [shape: f32[1,1,64], index: 2, kind: input, shape index: {}]   ;;  %s2354_s3 = inlined_call_operand.vmem [shape: f32[1,1,64], index: 3, kind: input, shape index: {}]   ;;  %s2355_s4 = inlined_call_operand.vmem [shape: f32[1,1,64], index: 4, kind: input, shape index: {}]   ;;  %s2356_s5 = inlined_call_operand.hbm [shape: bf16[1,2048,64], index: 5, kind: output, shape index: {}]  }
   0x1   :  { %12 = vsyncpa [#allocation3 + $0x1], 0  ;;  %s1838_s18 = smov 0   ;;  %s1840_s19 = smov 0  }
   0x2   :  { %s1842_s20 = smov 0   ;;  %s1844_s21 = smov 0  }
   0x3   :  { %s1846_s22 = smov 0   ;;  %s1848_s23 = smov 0  }
   0x4 LB: > { %s1438_s24 = sadd.s32 4294967295, %s1803_s23   ;;  %s1439_s25 = sadd.s32 4294967294, %s1803_s23   ;;  %s1803_s23 = sphi %s1848_s23, %s18_s23   ;;  %s1799_s22 = sphi %s1846_s22, %s2363_s22   ;;  %s1795_s21 = sphi %s1844_s21, %s2362_s21   ;;  %s1791_s20 = sphi %s1842_s20, %s2361_s20   ;;  %s1787_s19 = sphi %s1840_s19, %s2360_s19   ;;  %s1783_s18 = sphi %s1838_s18, %s2359_s18  }
   0x5   : > { %s27_s26 = sadd.s32 1, %s1799_s22  ;;  %s171_s27 = sadd.s32 1, %s1791_s20 }
   0x6   : > { %p28_p0 = scmp.ge.s32.totalorder %s27_s26, 4  ;;  %p181_p1 = scmp.ne.s32.totalorder %s1791_s20, %s1787_s19 }
   0x7   : > { %p182_p2 = scmp.eq.s32.totalorder %s1438_s24, 3  ;;  %p187_p3 = scmp.ne.s32.totalorder %s1787_s19, %s1783_s18 }
   0x8   : > { %s2365_s26 = smov (%p28_p0, %s27_s26), 0  ;;  %p188_p5 = scmp.eq.s32.totalorder %s1439_s25, 3 }
   0x9   : > { %p1878_p4 = por %p182_p2, %p181_p1  ;;  %s167_s29 = ssub.s32 %s1799_s22, %s2365_s26 }
   0xa   : > { %p1446_p6 = scmp.ge.s32.totalorder %s1803_s23, 1  ;;  %p169_p7 = scmp.eq.s32.totalorder %s167_s29, 0 }
   0xb   : > { %p1885_p8 = por %p188_p5, %p187_p3  ;;  %p245_p9 = scmp.lt.s32.totalorder %s1803_s23, 5 }
   0xc   : > { %s1891_s6 = scalar_select %p169_p7, %s1791_s20, %s171_s27  }
   0xd   : > { %p246_p10 = pnand %p1446_p6, %p245_p9 }
   0xe   : > { %s1448_s11 = sshll.u32 (!%p246_p10), %s1795_s21, 6  ;;  %s288_s7 = sand.u32 (!%p246_p10), 1, %s1787_s19  }
   0xf   : > { %249 = sbr.rel (%p246_p10) target bundleno = 300 (0x12c), region = 40  ;;  %p294_p11 = scmp.lt.s32.totalorder (!%p246_p10), %s1448_s11, 255 }
  0x10   : > { %s1447_s10 = sshll.u32 (!%p246_p10), %s288_s7, 8  ;;  %s1657_s12 = sshll.u32 (!%p246_p10), %s1795_s21, 8 }
  0x11   : > { %s1304_s21 = scalar_lea.hbm (!%p246_p10), %s2356_s5, %s1657_s12  ;;  %s1745_s8 = scalar_lea.hbm (!%p246_p10), %s2356_s5, 1024 }
  0x12   : > { %s1307_s16 = sshll.u32 (!%p246_p10), %s1304_s21, 4  ;;  %s1308_s16 = int_to_ptr.hbm [resolvable:$true] %s1307_s16 }
  0x13   : > { %s1739_s24 = sshra.s32 (!%p246_p10), %s1308_s16, 4  ;;  %s1740_s24 = int_to_ptr.hbm [resolvable:$true] %s1739_s24 }
  0x14   : > { %v1584_v0 = vld [vmem:[%s2352_s1 + $0x8] sm:$0xf]  ;;  %v1656_v1 = vld [vmem:[%s2352_s1 + $0x8] sm:$0x30]  ;;  %vm653_vm0 = vcmask 1044480   ;;  %vm654_vm1 = vcmask 1045504   ;;  %p1746_p1 = scmp.lt.s32.totalorder %s1740_s24, %s2356_s5 }
  0x15   : > { %v1585_v2 = vor.u32 %v1656_v1, %v1584_v0  ;;  %v1805_v3 = vmov 65535   ;;  %s2367_s11 = smov (!%p294_p11, %s1448_s11), 255  ;;  %v1655_v7 = vld [vmem:[%s2352_s1] sm:$0xff]  ;;  %vm556_vm2 = vcmask 220160   ;;  %vm1225_vm5 = vcmask 519168   ;;  %s1741_s25 = scalar_lea.hbm %s1740_s24, 256 }
  0x16   : > { %v655_v4 = vsel %vm653_vm0, 4294967295, %v1805_v3  ;;  %s1449_s14 = sshll.u32 %s2367_s11, 2  ;;  %v1975_v40 = vld [vmem:[%s2353_s2] ss:$0 sm:$0xff]  ;;  %s2000_s11 = scalar_lea.vmem [#allocation2], %s1447_s10 }
  0x17   : > { %v656_v5 = vsel %vm654_vm1, %v655_v4, 0  ;;  %s1906_s17 = scalar_lea.vmem %s2351_s0, %s1449_s14  ;;  %v1980_v41 = vld [vmem:[%s2354_s3] ss:$0 sm:$0xff]  ;;  %s1305_s15 = sshll.u32 %s2000_s11, 4  ;;  %s1306_s15 = int_to_ptr.vmem [resolvable:$true] %s1305_s15 }
  0x18   : > { %v658_v6 = vand.u32 %v1585_v2, %v656_v5  ;;  %v1623_v8 = vld [vmem:[%s1906_s17] sm:$0xff]  ;;  %v1624_v12 = vld [vmem:[%s1906_s17 + $0x8] sm:$0xff]  ;;  %v1625_v16 = vld [vmem:[%s1906_s17 + $0x10] sm:$0xff]  ;;  %p1742_p12 = scmp.ne.s32.totalorder %s1740_s24, %s1741_s25  ;;  %p1747_p2 = scmp.lt.s32.totalorder %s1745_s8, %s1741_s25 }
  0x19   : > { %v1631_v9 = vld [vmem:[%s1906_s17 + $0x40] sm:$0xff]  ;;  %v1632_v13 = vld [vmem:[%s1906_s17 + $0x48] sm:$0xff]  ;;  %v1633_v17 = vld [vmem:[%s1906_s17 + $0x50] sm:$0xff] }
  0x1a   : > { %666 = vmatpush.bf16.msra.mxu0 %v658_v6  ;;  %1658 = vmatpush.bf16.msra.mxu1 %v658_v6  ;;  %v1639_v10 = vld [vmem:[%s1906_s17 + $0x80] sm:$0xff]  ;;  %v1640_v14 = vld [vmem:[%s1906_s17 + $0x88] sm:$0xff]  ;;  %v1641_v18 = vld [vmem:[%s1906_s17 + $0x90] sm:$0xff]  ;;  %p1743_p13 = pnand %p1742_p12, %p1878_p4  ;;  %p1748_p3 = por %p1747_p2, %p1746_p1 }
  0x1b   : > { %1659 = vmatpush.bf16.msra.mxu2 %v658_v6  ;;  %1660 = vmatpush.bf16.msra.mxu3 %v658_v6  ;;  %v1647_v11 = vld [vmem:[%s1906_s17 + $0xc0] sm:$0xff]  ;;  %v1648_v15 = vld [vmem:[%s1906_s17 + $0xc8] sm:$0xff]  ;;  %v1649_v19 = vld [vmem:[%s1906_s17 + $0xd0] sm:$0xff] }
  0x1c   : > { %v1626_v20 = vld [vmem:[%s1906_s17 + $0x18] sm:$0xff]  ;;  %v1627_v24 = vld [vmem:[%s1906_s17 + $0x20] sm:$0xff]  ;;  %v1628_v28 = vld [vmem:[%s1906_s17 + $0x28] sm:$0xff]  ;;  %p1744_p0 = pneg %p1743_p13 }
  0x1d   : > { %v1634_v21 = vld [vmem:[%s1906_s17 + $0x58] sm:$0xff]  ;;  %v1635_v25 = vld [vmem:[%s1906_s17 + $0x60] sm:$0xff]  ;;  %v1636_v29 = vld [vmem:[%s1906_s17 + $0x68] sm:$0xff] }
  0x1e   : > { %667 = vmatpush.bf16.msra.mxu0 %v1655_v7  ;;  %1661 = vmatpush.bf16.msra.mxu1 %v1655_v7  ;;  %v1642_v22 = vld [vmem:[%s1906_s17 + $0x98] sm:$0xff]  ;;  %v1643_v26 = vld [vmem:[%s1906_s17 + $0xa0] sm:$0xff]  ;;  %v1644_v30 = vld [vmem:[%s1906_s17 + $0xa8] sm:$0xff]  ;;  %p1749_p5 = pnand %p1748_p3, %p1744_p0 }
  0x1f   : > { %1662 = vmatpush.bf16.msra.mxu2 %v1655_v7  ;;  %1663 = vmatpush.bf16.msra.mxu3 %v1655_v7  ;;  %v1650_v23 = vld [vmem:[%s1906_s17 + $0xd8] sm:$0xff]  ;;  %v1651_v27 = vld [vmem:[%s1906_s17 + $0xe0] sm:$0xff]  ;;  %v1652_v31 = vld [vmem:[%s1906_s17 + $0xe8] sm:$0xff] }
  0x20   : > { %v1629_v32 = vld [vmem:[%s1906_s17 + $0x30] sm:$0xff]  ;;  %v1630_v36 = vld [vmem:[%s1906_s17 + $0x38] sm:$0xff]  ;;  %v1987_v45 = vld [vmem:[%s2355_s4] ss:$0 sm:$0xff] }
  0x21   : > { %1586 = vmatmul.msk.bf16.vlgmr.msra.gmra.mxu0 %vm556_vm2, %v1623_v8  ;;  %1594 = vmatmul.msk.bf16.vlgmr.msra.gmra.mxu1 %vm556_vm2, %v1631_v9  ;;  %v1637_v33 = vld [vmem:[%s1906_s17 + $0x70] sm:$0xff]  ;;  %v1638_v37 = vld [vmem:[%s1906_s17 + $0x78] sm:$0xff] }
  0x22   : > { %1602 = vmatmul.msk.bf16.vlgmr.msra.gmra.mxu2 %vm556_vm2, %v1639_v10  ;;  %1610 = vmatmul.msk.bf16.vlgmr.msra.gmra.mxu3 %vm556_vm2, %v1647_v11  ;;  %v1645_v34 = vld [vmem:[%s1906_s17 + $0xb0] sm:$0xff]  ;;  %v1646_v38 = vld [vmem:[%s1906_s17 + $0xb8] sm:$0xff] }
  0x23   : > { %v1653_v35 = vld [vmem:[%s1906_s17 + $0xf0] sm:$0xff]  ;;  %v1654_v39 = vld [vmem:[%s1906_s17 + $0xf8] sm:$0xff]  ;;  %s1291_s17 = scalar_lea.sflag [#allocation3], %s288_s7 }
  0x31   : > { %1587 = vmatmul.msk.bf16.gmra.mxu0 %vm556_vm2, %v1624_v12  ;;  %1595 = vmatmul.msk.bf16.gmra.mxu1 %vm556_vm2, %v1632_v13 }
  0x32   : > { %1603 = vmatmul.msk.bf16.gmra.mxu2 %vm556_vm2, %v1640_v14  ;;  %1611 = vmatmul.msk.bf16.gmra.mxu3 %vm556_vm2, %v1648_v15 }
  0x41   : > { %1588 = vmatmul.msk.bf16.gmra.mxu0 %vm556_vm2, %v1625_v16  ;;  %1596 = vmatmul.msk.bf16.gmra.mxu1 %vm556_vm2, %v1633_v17 }
  0x42   : > { %1604 = vmatmul.msk.bf16.gmra.mxu2 %vm556_vm2, %v1641_v18  ;;  %1612 = vmatmul.msk.bf16.gmra.mxu3 %vm556_vm2, %v1649_v19 }
  0x51   : > { %1589 = vmatmul.msk.bf16.gmra.mxu0 %vm556_vm2, %v1626_v20  ;;  %1597 = vmatmul.msk.bf16.gmra.mxu1 %vm556_vm2, %v1634_v21 }
  0x52   : > { %1605 = vmatmul.msk.bf16.gmra.mxu2 %vm556_vm2, %v1642_v22  ;;  %1613 = vmatmul.msk.bf16.gmra.mxu3 %vm556_vm2, %v1650_v23 }
  0x61   : > { %1590 = vmatmul.msk.bf16.gmra.mxu0 %vm556_vm2, %v1627_v24  ;;  %1598 = vmatmul.msk.bf16.gmra.mxu1 %vm556_vm2, %v1635_v25 }
  0x62   : > { %1606 = vmatmul.msk.bf16.gmra.mxu2 %vm556_vm2, %v1643_v26  ;;  %1614 = vmatmul.msk.bf16.gmra.mxu3 %vm556_vm2, %v1651_v27 }
  0x71   : > { %1591 = vmatmul.msk.bf16.gmra.mxu0 %vm556_vm2, %v1628_v28  ;;  %1599 = vmatmul.msk.bf16.gmra.mxu1 %vm556_vm2, %v1636_v29 }
  0x72   : > { %1607 = vmatmul.msk.bf16.gmra.mxu2 %vm556_vm2, %v1644_v30  ;;  %1615 = vmatmul.msk.bf16.gmra.mxu3 %vm556_vm2, %v1652_v31 }
  0x81   : > { %1592 = vmatmul.msk.bf16.gmra.mxu0 %vm556_vm2, %v1629_v32  ;;  %1600 = vmatmul.msk.bf16.gmra.mxu1 %vm556_vm2, %v1637_v33 }
  0x82   : > { %1608 = vmatmul.msk.bf16.gmra.mxu2 %vm556_vm2, %v1645_v34  ;;  %1616 = vmatmul.msk.bf16.gmra.mxu3 %vm556_vm2, %v1653_v35 }
  0x91   : > { %1593 = vmatmul.msk.bf16.gmra.mxu0 %vm556_vm2, %v1630_v36  ;;  %1601 = vmatmul.msk.bf16.gmra.mxu1 %vm556_vm2, %v1638_v37 }
  0x92   : > { %1609 = vmatmul.msk.bf16.gmra.mxu2 %vm556_vm2, %v1646_v38  ;;  %1617 = vmatmul.msk.bf16.gmra.mxu3 %vm556_vm2, %v1654_v39 }
  0x9e   : > { %v669_v42 = vpop.f32.mrf.mxu0  ;;  %v709_v43 = vpop.f32.mrf.mxu1 }
  0x9f   : > { %v833_v44 = vmul.f32 %v1975_v40, %v669_v42  ;;  %v849_v46 = vmul.f32 %v1975_v40, %v709_v43 }
  0xa1   : > { %v901_v47 = vadd.f32 %v1980_v41, %v833_v44  ;;  %v917_v48 = vadd.f32 %v1980_v41, %v849_v46 }
  0xa3   : > { %vm965_vm3 = vcmp.ge.f32.partialorder %v901_v47, 0.0  ;;  %v1033_v49 = vmul.f32 %v1987_v45, %v901_v47  ;;  %vm981_vm4 = vcmp.ge.f32.partialorder %v917_v48, 0.0  ;;  %v1049_v50 = vmul.f32 %v1987_v45, %v917_v48 }
  0xa5   : > { %v1097_v51 = vsel %vm965_vm3, %v901_v47, %v1033_v49  ;;  %v1113_v52 = vsel %vm981_vm4, %v917_v48, %v1049_v50  ;;  %v749_v53 = vpop.f32.mrf.mxu2  ;;  %v789_v54 = vpop.f32.mrf.mxu3 }
  0xa6   : > { %v1161_v55 = vpack.c.bf16 %v1097_v51, %v1097_v51  ;;  %v1177_v56 = vpack.c.bf16 %v1113_v52, %v1113_v52  ;;  %v865_v57 = vmul.f32 %v1975_v40, %v749_v53  ;;  %v881_v58 = vmul.f32 %v1975_v40, %v789_v54  ;;  %v671_v59 = vpop.f32.mrf.mxu0  ;;  %v711_v60 = vpop.f32.mrf.mxu1 }
  0xa7   : > { %v834_v61 = vmul.f32 %v1975_v40, %v671_v59  ;;  %v850_v62 = vmul.f32 %v1975_v40, %v711_v60 }
  0xa8   : > { %1226 = vst.msk [vmem:[%s2000_s11] sm:$0xf] %vm1225_vm5, %v1161_v55  ;;  %v933_v63 = vadd.f32 %v1980_v41, %v865_v57  ;;  %v949_v0 = vadd.f32 %v1980_v41, %v881_v58 }
  0xa9   : > { %1242 = vst.msk [vmem:[%s2000_s11 + $0x40] sm:$0xf] %vm1225_vm5, %v1177_v56  ;;  %v902_v1 = vadd.f32 %v1980_v41, %v834_v61  ;;  %v918_v2 = vadd.f32 %v1980_v41, %v850_v62 }
  0xaa   : > { %vm997_vm6 = vcmp.ge.f32.partialorder %v933_v63, 0.0  ;;  %v1065_v3 = vmul.f32 %v1987_v45, %v933_v63  ;;  %vm1013_vm7 = vcmp.ge.f32.partialorder %v949_v0, 0.0  ;;  %v1081_v4 = vmul.f32 %v1987_v45, %v949_v0 }
  0xab   : > { %vm966_vm8 = vcmp.ge.f32.partialorder %v902_v1, 0.0  ;;  %v1034_v5 = vmul.f32 %v1987_v45, %v902_v1  ;;  %vm982_vm9 = vcmp.ge.f32.partialorder %v918_v2, 0.0  ;;  %v1050_v6 = vmul.f32 %v1987_v45, %v918_v2 }
  0xac   : > { %v1129_v7 = vsel %vm997_vm6, %v933_v63, %v1065_v3  ;;  %v1145_v8 = vsel %vm1013_vm7, %v949_v0, %v1081_v4 }
  0xad   : > { %v1193_v9 = vpack.c.bf16 %v1129_v7, %v1129_v7  ;;  %v1209_v10 = vpack.c.bf16 %v1145_v8, %v1145_v8  ;;  %v1098_v11 = vsel %vm966_vm8, %v902_v1, %v1034_v5  ;;  %v1114_v12 = vsel %vm982_vm9, %v918_v2, %v1050_v6  ;;  %v751_v13 = vpop.f32.mrf.mxu2  ;;  %v791_v14 = vpop.f32.mrf.mxu3 }
  0xae   : > { %v1162_v15 = vpack.c.bf16 %v1098_v11, %v1098_v11  ;;  %v1178_v16 = vpack.c.bf16 %v1114_v12, %v1114_v12  ;;  %v866_v17 = vmul.f32 %v1975_v40, %v751_v13  ;;  %v882_v18 = vmul.f32 %v1975_v40, %v791_v14  ;;  %v674_v19 = vpop.f32.mrf.mxu0  ;;  %v714_v20 = vpop.f32.mrf.mxu1 }
  0xaf   : > { %1258 = vst.msk [vmem:[%s2000_s11 + $0x80] sm:$0xf] %vm1225_vm5, %v1193_v9  ;;  %v835_v21 = vmul.f32 %v1975_v40, %v674_v19  ;;  %v851_v22 = vmul.f32 %v1975_v40, %v714_v20 }
  0xb0   : > { %1274 = vst.msk [vmem:[%s2000_s11 + $0xc0] sm:$0xf] %vm1225_vm5, %v1209_v10  ;;  %v934_v23 = vadd.f32 %v1980_v41, %v866_v17  ;;  %v950_v24 = vadd.f32 %v1980_v41, %v882_v18 }
  0xb1   : > { %1227 = vst.msk [vmem:[%s2000_s11 + $0x4] sm:$0xf] %vm1225_vm5, %v1162_v15  ;;  %v903_v25 = vadd.f32 %v1980_v41, %v835_v21  ;;  %v919_v26 = vadd.f32 %v1980_v41, %v851_v22 }
  0xb2   : > { %1243 = vst.msk [vmem:[%s2000_s11 + $0x44] sm:$0xf] %vm1225_vm5, %v1178_v16  ;;  %vm998_vm10 = vcmp.ge.f32.partialorder %v934_v23, 0.0  ;;  %v1066_v27 = vmul.f32 %v1987_v45, %v934_v23  ;;  %vm1014_vm11 = vcmp.ge.f32.partialorder %v950_v24, 0.0  ;;  %v1082_v28 = vmul.f32 %v1987_v45, %v950_v24 }
  0xb3   : > { %vm967_vm12 = vcmp.ge.f32.partialorder %v903_v25, 0.0  ;;  %v1035_v29 = vmul.f32 %v1987_v45, %v903_v25  ;;  %vm983_vm13 = vcmp.ge.f32.partialorder %v919_v26, 0.0  ;;  %v1051_v30 = vmul.f32 %v1987_v45, %v919_v26 }
  0xb4   : > { %v1130_v31 = vsel %vm998_vm10, %v934_v23, %v1066_v27  ;;  %v1146_v32 = vsel %vm1014_vm11, %v950_v24, %v1082_v28 }
  0xb5   : > { %v1194_v33 = vpack.c.bf16 %v1130_v31, %v1130_v31  ;;  %v1210_v34 = vpack.c.bf16 %v1146_v32, %v1146_v32  ;;  %v1099_v35 = vsel %vm967_vm12, %v903_v25, %v1035_v29  ;;  %v1115_v36 = vsel %vm983_vm13, %v919_v26, %v1051_v30  ;;  %v754_v37 = vpop.f32.mrf.mxu2  ;;  %v794_v38 = vpop.f32.mrf.mxu3 }
  0xb6   : > { %v1163_v39 = vpack.c.bf16 %v1099_v35, %v1099_v35  ;;  %v1179_v42 = vpack.c.bf16 %v1115_v36, %v1115_v36  ;;  %v867_v43 = vmul.f32 %v1975_v40, %v754_v37  ;;  %v883_v44 = vmul.f32 %v1975_v40, %v794_v38  ;;  %v676_v46 = vpop.f32.mrf.mxu0  ;;  %v716_v47 = vpop.f32.mrf.mxu1 }
  0xb7   : > { %1259 = vst.msk [vmem:[%s2000_s11 + $0x84] sm:$0xf] %vm1225_vm5, %v1194_v33  ;;  %v836_v48 = vmul.f32 %v1975_v40, %v676_v46  ;;  %v852_v49 = vmul.f32 %v1975_v40, %v716_v47 }
  0xb8   : > { %1275 = vst.msk [vmem:[%s2000_s11 + $0xc4] sm:$0xf] %vm1225_vm5, %v1210_v34  ;;  %v935_v50 = vadd.f32 %v1980_v41, %v867_v43  ;;  %v951_v51 = vadd.f32 %v1980_v41, %v883_v44 }
  0xb9   : > { %1228 = vst.msk [vmem:[%s2000_s11 + $0x8] sm:$0xf] %vm1225_vm5, %v1163_v39  ;;  %v904_v52 = vadd.f32 %v1980_v41, %v836_v48  ;;  %v920_v53 = vadd.f32 %v1980_v41, %v852_v49 }
  0xba   : > { %1244 = vst.msk [vmem:[%s2000_s11 + $0x48] sm:$0xf] %vm1225_vm5, %v1179_v42  ;;  %vm999_vm14 = vcmp.ge.f32.partialorder %v935_v50, 0.0  ;;  %v1067_v54 = vmul.f32 %v1987_v45, %v935_v50  ;;  %vm1015_vm15 = vcmp.ge.f32.partialorder %v951_v51, 0.0  ;;  %v1083_v55 = vmul.f32 %v1987_v45, %v951_v51 }
  0xbb   : > { %vm968_vm0 = vcmp.ge.f32.partialorder %v904_v52, 0.0  ;;  %v1036_v56 = vmul.f32 %v1987_v45, %v904_v52  ;;  %vm984_vm1 = vcmp.ge.f32.partialorder %v920_v53, 0.0  ;;  %v1052_v57 = vmul.f32 %v1987_v45, %v920_v53 }
  0xbc   : > { %v1131_v58 = vsel %vm999_vm14, %v935_v50, %v1067_v54  ;;  %v1147_v59 = vsel %vm1015_vm15, %v951_v51, %v1083_v55 }
  0xbd   : > { %v1195_v60 = vpack.c.bf16 %v1131_v58, %v1131_v58  ;;  %v1211_v61 = vpack.c.bf16 %v1147_v59, %v1147_v59  ;;  %v1100_v62 = vsel %vm968_vm0, %v904_v52, %v1036_v56  ;;  %v1116_v63 = vsel %vm984_vm1, %v920_v53, %v1052_v57  ;;  %v756_v0 = vpop.f32.mrf.mxu2  ;;  %v796_v1 = vpop.f32.mrf.mxu3 }
  0xbe   : > { %v1164_v2 = vpack.c.bf16 %v1100_v62, %v1100_v62  ;;  %v1180_v3 = vpack.c.bf16 %v1116_v63, %v1116_v63  ;;  %v868_v4 = vmul.f32 %v1975_v40, %v756_v0  ;;  %v884_v5 = vmul.f32 %v1975_v40, %v796_v1  ;;  %v679_v6 = vpop.f32.mrf.mxu0  ;;  %v719_v7 = vpop.f32.mrf.mxu1 }
  0xbf   : > { %1260 = vst.msk [vmem:[%s2000_s11 + $0x88] sm:$0xf] %vm1225_vm5, %v1195_v60  ;;  %v837_v8 = vmul.f32 %v1975_v40, %v679_v6  ;;  %v853_v9 = vmul.f32 %v1975_v40, %v719_v7 }
  0xc0   : > { %1276 = vst.msk [vmem:[%s2000_s11 + $0xc8] sm:$0xf] %vm1225_vm5, %v1211_v61  ;;  %v936_v10 = vadd.f32 %v1980_v41, %v868_v4  ;;  %v952_v11 = vadd.f32 %v1980_v41, %v884_v5 }
  0xc1   : > { %1229 = vst.msk [vmem:[%s2000_s11 + $0xc] sm:$0xf] %vm1225_vm5, %v1164_v2  ;;  %v905_v12 = vadd.f32 %v1980_v41, %v837_v8  ;;  %v921_v13 = vadd.f32 %v1980_v41, %v853_v9 }
  0xc2   : > { %1245 = vst.msk [vmem:[%s2000_s11 + $0x4c] sm:$0xf] %vm1225_vm5, %v1180_v3  ;;  %vm1000_vm2 = vcmp.ge.f32.partialorder %v936_v10, 0.0  ;;  %v1068_v14 = vmul.f32 %v1987_v45, %v936_v10  ;;  %vm1016_vm3 = vcmp.ge.f32.partialorder %v952_v11, 0.0  ;;  %v1084_v15 = vmul.f32 %v1987_v45, %v952_v11 }
  0xc3   : > { %vm969_vm4 = vcmp.ge.f32.partialorder %v905_v12, 0.0  ;;  %v1037_v16 = vmul.f32 %v1987_v45, %v905_v12  ;;  %vm985_vm6 = vcmp.ge.f32.partialorder %v921_v13, 0.0  ;;  %v1053_v17 = vmul.f32 %v1987_v45, %v921_v13 }
  0xc4   : > { %v1132_v18 = vsel %vm1000_vm2, %v936_v10, %v1068_v14  ;;  %v1148_v19 = vsel %vm1016_vm3, %v952_v11, %v1084_v15 }
  0xc5   : > { %v1196_v20 = vpack.c.bf16 %v1132_v18, %v1132_v18  ;;  %v1212_v21 = vpack.c.bf16 %v1148_v19, %v1148_v19  ;;  %v1101_v22 = vsel %vm969_vm4, %v905_v12, %v1037_v16  ;;  %v1117_v23 = vsel %vm985_vm6, %v921_v13, %v1053_v17  ;;  %v759_v24 = vpop.f32.mrf.mxu2  ;;  %v799_v25 = vpop.f32.mrf.mxu3 }
  0xc6   : > { %v1165_v26 = vpack.c.bf16 %v1101_v22, %v1101_v22  ;;  %v1181_v27 = vpack.c.bf16 %v1117_v23, %v1117_v23  ;;  %v869_v28 = vmul.f32 %v1975_v40, %v759_v24  ;;  %v885_v29 = vmul.f32 %v1975_v40, %v799_v25  ;;  %v681_v30 = vpop.f32.mrf.mxu0  ;;  %v721_v31 = vpop.f32.mrf.mxu1 }
  0xc7   : > { %1261 = vst.msk [vmem:[%s2000_s11 + $0x8c] sm:$0xf] %vm1225_vm5, %v1196_v20  ;;  %v838_v32 = vmul.f32 %v1975_v40, %v681_v30  ;;  %v854_v33 = vmul.f32 %v1975_v40, %v721_v31 }
  0xc8   : > { %1277 = vst.msk [vmem:[%s2000_s11 + $0xcc] sm:$0xf] %vm1225_vm5, %v1212_v21  ;;  %v937_v34 = vadd.f32 %v1980_v41, %v869_v28  ;;  %v953_v35 = vadd.f32 %v1980_v41, %v885_v29 }
  0xc9   : > { %1230 = vst.msk [vmem:[%s2000_s11 + $0x10] sm:$0xf] %vm1225_vm5, %v1165_v26  ;;  %v906_v36 = vadd.f32 %v1980_v41, %v838_v32  ;;  %v922_v37 = vadd.f32 %v1980_v41, %v854_v33 }
  0xca   : > { %1246 = vst.msk [vmem:[%s2000_s11 + $0x50] sm:$0xf] %vm1225_vm5, %v1181_v27  ;;  %vm1001_vm7 = vcmp.ge.f32.partialorder %v937_v34, 0.0  ;;  %v1069_v38 = vmul.f32 %v1987_v45, %v937_v34  ;;  %vm1017_vm8 = vcmp.ge.f32.partialorder %v953_v35, 0.0  ;;  %v1085_v39 = vmul.f32 %v1987_v45, %v953_v35 }
  0xcb   : > { %vm970_vm9 = vcmp.ge.f32.partialorder %v906_v36, 0.0  ;;  %v1038_v42 = vmul.f32 %v1987_v45, %v906_v36  ;;  %vm986_vm10 = vcmp.ge.f32.partialorder %v922_v37, 0.0  ;;  %v1054_v43 = vmul.f32 %v1987_v45, %v922_v37 }
  0xcc   : > { %v1133_v44 = vsel %vm1001_vm7, %v937_v34, %v1069_v38  ;;  %v1149_v46 = vsel %vm1017_vm8, %v953_v35, %v1085_v39 }
  0xcd   : > { %v1197_v47 = vpack.c.bf16 %v1133_v44, %v1133_v44  ;;  %v1213_v48 = vpack.c.bf16 %v1149_v46, %v1149_v46  ;;  %v1102_v49 = vsel %vm970_vm9, %v906_v36, %v1038_v42  ;;  %v1118_v50 = vsel %vm986_vm10, %v922_v37, %v1054_v43  ;;  %v761_v51 = vpop.f32.mrf.mxu2  ;;  %v801_v52 = vpop.f32.mrf.mxu3 }
  0xce   : > { %v1166_v53 = vpack.c.bf16 %v1102_v49, %v1102_v49  ;;  %v1182_v54 = vpack.c.bf16 %v1118_v50, %v1118_v50  ;;  %v870_v55 = vmul.f32 %v1975_v40, %v761_v51  ;;  %v886_v56 = vmul.f32 %v1975_v40, %v801_v52  ;;  %v684_v57 = vpop.f32.mrf.mxu0  ;;  %v724_v58 = vpop.f32.mrf.mxu1 }
  0xcf   : > { %1262 = vst.msk [vmem:[%s2000_s11 + $0x90] sm:$0xf] %vm1225_vm5, %v1197_v47  ;;  %v839_v59 = vmul.f32 %v1975_v40, %v684_v57  ;;  %v855_v60 = vmul.f32 %v1975_v40, %v724_v58 }
  0xd0   : > { %1278 = vst.msk [vmem:[%s2000_s11 + $0xd0] sm:$0xf] %vm1225_vm5, %v1213_v48  ;;  %v938_v61 = vadd.f32 %v1980_v41, %v870_v55  ;;  %v954_v62 = vadd.f32 %v1980_v41, %v886_v56 }
  0xd1   : > { %1231 = vst.msk [vmem:[%s2000_s11 + $0x14] sm:$0xf] %vm1225_vm5, %v1166_v53  ;;  %v907_v63 = vadd.f32 %v1980_v41, %v839_v59  ;;  %v923_v0 = vadd.f32 %v1980_v41, %v855_v60 }
  0xd2   : > { %1247 = vst.msk [vmem:[%s2000_s11 + $0x54] sm:$0xf] %vm1225_vm5, %v1182_v54  ;;  %vm1002_vm11 = vcmp.ge.f32.partialorder %v938_v61, 0.0  ;;  %v1070_v1 = vmul.f32 %v1987_v45, %v938_v61  ;;  %vm1018_vm12 = vcmp.ge.f32.partialorder %v954_v62, 0.0  ;;  %v1086_v2 = vmul.f32 %v1987_v45, %v954_v62 }
  0xd3   : > { %vm971_vm13 = vcmp.ge.f32.partialorder %v907_v63, 0.0  ;;  %v1039_v3 = vmul.f32 %v1987_v45, %v907_v63  ;;  %vm987_vm14 = vcmp.ge.f32.partialorder %v923_v0, 0.0  ;;  %v1055_v4 = vmul.f32 %v1987_v45, %v923_v0 }
  0xd4   : > { %v1134_v5 = vsel %vm1002_vm11, %v938_v61, %v1070_v1  ;;  %v1150_v6 = vsel %vm1018_vm12, %v954_v62, %v1086_v2 }
  0xd5   : > { %v1198_v7 = vpack.c.bf16 %v1134_v5, %v1134_v5  ;;  %v1214_v8 = vpack.c.bf16 %v1150_v6, %v1150_v6  ;;  %v1103_v9 = vsel %vm971_vm13, %v907_v63, %v1039_v3  ;;  %v1119_v10 = vsel %vm987_vm14, %v923_v0, %v1055_v4  ;;  %v764_v11 = vpop.f32.mrf.mxu2  ;;  %v804_v12 = vpop.f32.mrf.mxu3 }
  0xd6   : > { %v1167_v13 = vpack.c.bf16 %v1103_v9, %v1103_v9  ;;  %v1183_v14 = vpack.c.bf16 %v1119_v10, %v1119_v10  ;;  %v871_v15 = vmul.f32 %v1975_v40, %v764_v11  ;;  %v887_v16 = vmul.f32 %v1975_v40, %v804_v12  ;;  %v686_v17 = vpop.f32.mrf.mxu0  ;;  %v726_v18 = vpop.f32.mrf.mxu1 }
  0xd7   : > { %1263 = vst.msk [vmem:[%s2000_s11 + $0x94] sm:$0xf] %vm1225_vm5, %v1198_v7  ;;  %v840_v19 = vmul.f32 %v1975_v40, %v686_v17  ;;  %v856_v20 = vmul.f32 %v1975_v40, %v726_v18 }
  0xd8   : > { %1279 = vst.msk [vmem:[%s2000_s11 + $0xd4] sm:$0xf] %vm1225_vm5, %v1214_v8  ;;  %v939_v21 = vadd.f32 %v1980_v41, %v871_v15  ;;  %v955_v22 = vadd.f32 %v1980_v41, %v887_v16 }
  0xd9   : > { %1232 = vst.msk [vmem:[%s2000_s11 + $0x18] sm:$0xf] %vm1225_vm5, %v1167_v13  ;;  %v908_v23 = vadd.f32 %v1980_v41, %v840_v19  ;;  %v924_v24 = vadd.f32 %v1980_v41, %v856_v20 }
  0xda   : > { %1248 = vst.msk [vmem:[%s2000_s11 + $0x58] sm:$0xf] %vm1225_vm5, %v1183_v14  ;;  %vm1003_vm15 = vcmp.ge.f32.partialorder %v939_v21, 0.0  ;;  %v1071_v25 = vmul.f32 %v1987_v45, %v939_v21  ;;  %vm1019_vm0 = vcmp.ge.f32.partialorder %v955_v22, 0.0  ;;  %v1087_v26 = vmul.f32 %v1987_v45, %v955_v22 }
  0xdb   : > { %vm972_vm1 = vcmp.ge.f32.partialorder %v908_v23, 0.0  ;;  %v1040_v27 = vmul.f32 %v1987_v45, %v908_v23  ;;  %vm988_vm2 = vcmp.ge.f32.partialorder %v924_v24, 0.0  ;;  %v1056_v28 = vmul.f32 %v1987_v45, %v924_v24 }
  0xdc   : > { %v1135_v29 = vsel %vm1003_vm15, %v939_v21, %v1071_v25  ;;  %v1151_v30 = vsel %vm1019_vm0, %v955_v22, %v1087_v26 }
  0xdd   : > { %v1199_v31 = vpack.c.bf16 %v1135_v29, %v1135_v29  ;;  %v1215_v32 = vpack.c.bf16 %v1151_v30, %v1151_v30  ;;  %v1104_v33 = vsel %vm972_vm1, %v908_v23, %v1040_v27  ;;  %v1120_v34 = vsel %vm988_vm2, %v924_v24, %v1056_v28  ;;  %v766_v35 = vpop.f32.mrf.mxu2  ;;  %v806_v36 = vpop.f32.mrf.mxu3 }
  0xde   : > { %v1168_v37 = vpack.c.bf16 %v1104_v33, %v1104_v33  ;;  %v1184_v38 = vpack.c.bf16 %v1120_v34, %v1120_v34  ;;  %v872_v39 = vmul.f32 %v1975_v40, %v766_v35  ;;  %v888_v42 = vmul.f32 %v1975_v40, %v806_v36  ;;  %v689_v43 = vpop.f32.mrf.mxu0  ;;  %v729_v44 = vpop.f32.mrf.mxu1 }
  0xdf   : > { %1264 = vst.msk [vmem:[%s2000_s11 + $0x98] sm:$0xf] %vm1225_vm5, %v1199_v31  ;;  %v841_v46 = vmul.f32 %v1975_v40, %v689_v43  ;;  %v857_v47 = vmul.f32 %v1975_v40, %v729_v44 }
  0xe0   : > { %1280 = vst.msk [vmem:[%s2000_s11 + $0xd8] sm:$0xf] %vm1225_vm5, %v1215_v32  ;;  %v940_v48 = vadd.f32 %v1980_v41, %v872_v39  ;;  %v956_v49 = vadd.f32 %v1980_v41, %v888_v42 }
  0xe1   : > { %1233 = vst.msk [vmem:[%s2000_s11 + $0x1c] sm:$0xf] %vm1225_vm5, %v1168_v37  ;;  %v909_v50 = vadd.f32 %v1980_v41, %v841_v46  ;;  %v925_v51 = vadd.f32 %v1980_v41, %v857_v47 }
  0xe2   : > { %1249 = vst.msk [vmem:[%s2000_s11 + $0x5c] sm:$0xf] %vm1225_vm5, %v1184_v38  ;;  %vm1004_vm3 = vcmp.ge.f32.partialorder %v940_v48, 0.0  ;;  %v1072_v52 = vmul.f32 %v1987_v45, %v940_v48  ;;  %vm1020_vm4 = vcmp.ge.f32.partialorder %v956_v49, 0.0  ;;  %v1088_v53 = vmul.f32 %v1987_v45, %v956_v49 }
  0xe3   : > { %vm973_vm6 = vcmp.ge.f32.partialorder %v909_v50, 0.0  ;;  %v1041_v54 = vmul.f32 %v1987_v45, %v909_v50  ;;  %vm989_vm7 = vcmp.ge.f32.partialorder %v925_v51, 0.0  ;;  %v1057_v55 = vmul.f32 %v1987_v45, %v925_v51 }
  0xe4   : > { %v1136_v56 = vsel %vm1004_vm3, %v940_v48, %v1072_v52  ;;  %v1152_v57 = vsel %vm1020_vm4, %v956_v49, %v1088_v53 }
  0xe5   : > { %v1200_v58 = vpack.c.bf16 %v1136_v56, %v1136_v56  ;;  %v1216_v59 = vpack.c.bf16 %v1152_v57, %v1152_v57  ;;  %v1105_v60 = vsel %vm973_vm6, %v909_v50, %v1041_v54  ;;  %v1121_v61 = vsel %vm989_vm7, %v925_v51, %v1057_v55  ;;  %v769_v62 = vpop.f32.mrf.mxu2  ;;  %v809_v63 = vpop.f32.mrf.mxu3 }
  0xe6   : > { %v1169_v0 = vpack.c.bf16 %v1105_v60, %v1105_v60  ;;  %v1185_v1 = vpack.c.bf16 %v1121_v61, %v1121_v61  ;;  %v873_v2 = vmul.f32 %v1975_v40, %v769_v62  ;;  %v889_v3 = vmul.f32 %v1975_v40, %v809_v63  ;;  %v691_v4 = vpop.f32.mrf.mxu0  ;;  %v731_v5 = vpop.f32.mrf.mxu1 }
  0xe7   : > { %1265 = vst.msk [vmem:[%s2000_s11 + $0x9c] sm:$0xf] %vm1225_vm5, %v1200_v58  ;;  %v842_v6 = vmul.f32 %v1975_v40, %v691_v4  ;;  %v858_v7 = vmul.f32 %v1975_v40, %v731_v5 }
  0xe8   : > { %1281 = vst.msk [vmem:[%s2000_s11 + $0xdc] sm:$0xf] %vm1225_vm5, %v1216_v59  ;;  %v941_v8 = vadd.f32 %v1980_v41, %v873_v2  ;;  %v957_v9 = vadd.f32 %v1980_v41, %v889_v3 }
  0xe9   : > { %1234 = vst.msk [vmem:[%s2000_s11 + $0x20] sm:$0xf] %vm1225_vm5, %v1169_v0  ;;  %v910_v10 = vadd.f32 %v1980_v41, %v842_v6  ;;  %v926_v11 = vadd.f32 %v1980_v41, %v858_v7 }
  0xea   : > { %1250 = vst.msk [vmem:[%s2000_s11 + $0x60] sm:$0xf] %vm1225_vm5, %v1185_v1  ;;  %vm1005_vm8 = vcmp.ge.f32.partialorder %v941_v8, 0.0  ;;  %v1073_v12 = vmul.f32 %v1987_v45, %v941_v8  ;;  %vm1021_vm9 = vcmp.ge.f32.partialorder %v957_v9, 0.0  ;;  %v1089_v13 = vmul.f32 %v1987_v45, %v957_v9 }
  0xeb   : > { %vm974_vm10 = vcmp.ge.f32.partialorder %v910_v10, 0.0  ;;  %v1042_v14 = vmul.f32 %v1987_v45, %v910_v10  ;;  %vm990_vm11 = vcmp.ge.f32.partialorder %v926_v11, 0.0  ;;  %v1058_v15 = vmul.f32 %v1987_v45, %v926_v11 }
  0xec   : > { %v1137_v16 = vsel %vm1005_vm8, %v941_v8, %v1073_v12  ;;  %v1153_v17 = vsel %vm1021_vm9, %v957_v9, %v1089_v13 }
  0xed   : > { %v1201_v18 = vpack.c.bf16 %v1137_v16, %v1137_v16  ;;  %v1217_v19 = vpack.c.bf16 %v1153_v17, %v1153_v17  ;;  %v1106_v20 = vsel %vm974_vm10, %v910_v10, %v1042_v14  ;;  %v1122_v21 = vsel %vm990_vm11, %v926_v11, %v1058_v15  ;;  %v771_v22 = vpop.f32.mrf.mxu2  ;;  %v811_v23 = vpop.f32.mrf.mxu3 }
  0xee   : > { %v1170_v24 = vpack.c.bf16 %v1106_v20, %v1106_v20  ;;  %v1186_v25 = vpack.c.bf16 %v1122_v21, %v1122_v21  ;;  %v874_v26 = vmul.f32 %v1975_v40, %v771_v22  ;;  %v890_v27 = vmul.f32 %v1975_v40, %v811_v23  ;;  %v694_v28 = vpop.f32.mrf.mxu0  ;;  %v734_v29 = vpop.f32.mrf.mxu1 }
  0xef   : > { %1266 = vst.msk [vmem:[%s2000_s11 + $0xa0] sm:$0xf] %vm1225_vm5, %v1201_v18  ;;  %v843_v30 = vmul.f32 %v1975_v40, %v694_v28  ;;  %v859_v31 = vmul.f32 %v1975_v40, %v734_v29 }
  0xf0   : > { %1282 = vst.msk [vmem:[%s2000_s11 + $0xe0] sm:$0xf] %vm1225_vm5, %v1217_v19  ;;  %v942_v32 = vadd.f32 %v1980_v41, %v874_v26  ;;  %v958_v33 = vadd.f32 %v1980_v41, %v890_v27 }
  0xf1   : > { %1235 = vst.msk [vmem:[%s2000_s11 + $0x24] sm:$0xf] %vm1225_vm5, %v1170_v24  ;;  %v911_v34 = vadd.f32 %v1980_v41, %v843_v30  ;;  %v927_v35 = vadd.f32 %v1980_v41, %v859_v31 }
  0xf2   : > { %1251 = vst.msk [vmem:[%s2000_s11 + $0x64] sm:$0xf] %vm1225_vm5, %v1186_v25  ;;  %vm1006_vm12 = vcmp.ge.f32.partialorder %v942_v32, 0.0  ;;  %v1074_v36 = vmul.f32 %v1987_v45, %v942_v32  ;;  %vm1022_vm13 = vcmp.ge.f32.partialorder %v958_v33, 0.0  ;;  %v1090_v37 = vmul.f32 %v1987_v45, %v958_v33 }
  0xf3   : > { %vm975_vm14 = vcmp.ge.f32.partialorder %v911_v34, 0.0  ;;  %v1043_v38 = vmul.f32 %v1987_v45, %v911_v34  ;;  %vm991_vm15 = vcmp.ge.f32.partialorder %v927_v35, 0.0  ;;  %v1059_v39 = vmul.f32 %v1987_v45, %v927_v35 }
  0xf4   : > { %v1138_v42 = vsel %vm1006_vm12, %v942_v32, %v1074_v36  ;;  %v1154_v43 = vsel %vm1022_vm13, %v958_v33, %v1090_v37 }
  0xf5   : > { %v1202_v44 = vpack.c.bf16 %v1138_v42, %v1138_v42  ;;  %v1218_v46 = vpack.c.bf16 %v1154_v43, %v1154_v43  ;;  %v1107_v47 = vsel %vm975_vm14, %v911_v34, %v1043_v38  ;;  %v1123_v48 = vsel %vm991_vm15, %v927_v35, %v1059_v39  ;;  %v774_v49 = vpop.f32.mrf.mxu2  ;;  %v814_v50 = vpop.f32.mrf.mxu3 }
  0xf6   : > { %v1171_v51 = vpack.c.bf16 %v1107_v47, %v1107_v47  ;;  %v1187_v52 = vpack.c.bf16 %v1123_v48, %v1123_v48  ;;  %v875_v53 = vmul.f32 %v1975_v40, %v774_v49  ;;  %v891_v54 = vmul.f32 %v1975_v40, %v814_v50  ;;  %v696_v55 = vpop.f32.mrf.mxu0  ;;  %v736_v56 = vpop.f32.mrf.mxu1 }
  0xf7   : > { %1267 = vst.msk [vmem:[%s2000_s11 + $0xa4] sm:$0xf] %vm1225_vm5, %v1202_v44  ;;  %v844_v57 = vmul.f32 %v1975_v40, %v696_v55  ;;  %v860_v58 = vmul.f32 %v1975_v40, %v736_v56 }
  0xf8   : > { %1283 = vst.msk [vmem:[%s2000_s11 + $0xe4] sm:$0xf] %vm1225_vm5, %v1218_v46  ;;  %v943_v59 = vadd.f32 %v1980_v41, %v875_v53  ;;  %v959_v60 = vadd.f32 %v1980_v41, %v891_v54 }
  0xf9   : > { %1236 = vst.msk [vmem:[%s2000_s11 + $0x28] sm:$0xf] %vm1225_vm5, %v1171_v51  ;;  %v912_v61 = vadd.f32 %v1980_v41, %v844_v57  ;;  %v928_v62 = vadd.f32 %v1980_v41, %v860_v58 }
  0xfa   : > { %1252 = vst.msk [vmem:[%s2000_s11 + $0x68] sm:$0xf] %vm1225_vm5, %v1187_v52  ;;  %vm1007_vm0 = vcmp.ge.f32.partialorder %v943_v59, 0.0  ;;  %v1075_v63 = vmul.f32 %v1987_v45, %v943_v59  ;;  %vm1023_vm1 = vcmp.ge.f32.partialorder %v959_v60, 0.0  ;;  %v1091_v0 = vmul.f32 %v1987_v45, %v959_v60 }
  0xfb   : > { %vm976_vm2 = vcmp.ge.f32.partialorder %v912_v61, 0.0  ;;  %v1044_v1 = vmul.f32 %v1987_v45, %v912_v61  ;;  %vm992_vm3 = vcmp.ge.f32.partialorder %v928_v62, 0.0  ;;  %v1060_v2 = vmul.f32 %v1987_v45, %v928_v62 }
  0xfc   : > { %v1139_v3 = vsel %vm1007_vm0, %v943_v59, %v1075_v63  ;;  %v1155_v4 = vsel %vm1023_vm1, %v959_v60, %v1091_v0 }
  0xfd   : > { %v1203_v5 = vpack.c.bf16 %v1139_v3, %v1139_v3  ;;  %v1219_v6 = vpack.c.bf16 %v1155_v4, %v1155_v4  ;;  %v1108_v7 = vsel %vm976_vm2, %v912_v61, %v1044_v1  ;;  %v1124_v8 = vsel %vm992_vm3, %v928_v62, %v1060_v2  ;;  %v776_v9 = vpop.f32.mrf.mxu2  ;;  %v816_v10 = vpop.f32.mrf.mxu3 }
  0xfe   : > { %v1172_v11 = vpack.c.bf16 %v1108_v7, %v1108_v7  ;;  %v1188_v12 = vpack.c.bf16 %v1124_v8, %v1124_v8  ;;  %v876_v13 = vmul.f32 %v1975_v40, %v776_v9  ;;  %v892_v14 = vmul.f32 %v1975_v40, %v816_v10  ;;  %v699_v15 = vpop.f32.mrf.mxu0  ;;  %v739_v16 = vpop.f32.mrf.mxu1 }
  0xff   : > { %1268 = vst.msk [vmem:[%s2000_s11 + $0xa8] sm:$0xf] %vm1225_vm5, %v1203_v5  ;;  %v845_v17 = vmul.f32 %v1975_v40, %v699_v15  ;;  %v861_v18 = vmul.f32 %v1975_v40, %v739_v16 }
 0x100   : > { %1284 = vst.msk [vmem:[%s2000_s11 + $0xe8] sm:$0xf] %vm1225_vm5, %v1219_v6  ;;  %v944_v19 = vadd.f32 %v1980_v41, %v876_v13  ;;  %v960_v20 = vadd.f32 %v1980_v41, %v892_v14 }
 0x101   : > { %1237 = vst.msk [vmem:[%s2000_s11 + $0x2c] sm:$0xf] %vm1225_vm5, %v1172_v11  ;;  %v913_v21 = vadd.f32 %v1980_v41, %v845_v17  ;;  %v929_v22 = vadd.f32 %v1980_v41, %v861_v18 }
 0x102   : > { %1253 = vst.msk [vmem:[%s2000_s11 + $0x6c] sm:$0xf] %vm1225_vm5, %v1188_v12  ;;  %vm1008_vm4 = vcmp.ge.f32.partialorder %v944_v19, 0.0  ;;  %v1076_v23 = vmul.f32 %v1987_v45, %v944_v19  ;;  %vm1024_vm6 = vcmp.ge.f32.partialorder %v960_v20, 0.0  ;;  %v1092_v24 = vmul.f32 %v1987_v45, %v960_v20 }
 0x103   : > { %vm977_vm7 = vcmp.ge.f32.partialorder %v913_v21, 0.0  ;;  %v1045_v25 = vmul.f32 %v1987_v45, %v913_v21  ;;  %vm993_vm8 = vcmp.ge.f32.partialorder %v929_v22, 0.0  ;;  %v1061_v26 = vmul.f32 %v1987_v45, %v929_v22 }
 0x104   : > { %v1140_v27 = vsel %vm1008_vm4, %v944_v19, %v1076_v23  ;;  %v1156_v28 = vsel %vm1024_vm6, %v960_v20, %v1092_v24 }
 0x105   : > { %v1204_v29 = vpack.c.bf16 %v1140_v27, %v1140_v27  ;;  %v1220_v30 = vpack.c.bf16 %v1156_v28, %v1156_v28  ;;  %v1109_v31 = vsel %vm977_vm7, %v913_v21, %v1045_v25  ;;  %v1125_v32 = vsel %vm993_vm8, %v929_v22, %v1061_v26  ;;  %v779_v33 = vpop.f32.mrf.mxu2  ;;  %v819_v34 = vpop.f32.mrf.mxu3 }
 0x106   : > { %v1173_v35 = vpack.c.bf16 %v1109_v31, %v1109_v31  ;;  %v1189_v36 = vpack.c.bf16 %v1125_v32, %v1125_v32  ;;  %v877_v37 = vmul.f32 %v1975_v40, %v779_v33  ;;  %v893_v38 = vmul.f32 %v1975_v40, %v819_v34  ;;  %v701_v39 = vpop.f32.mrf.mxu0  ;;  %v741_v42 = vpop.f32.mrf.mxu1 }
 0x107   : > { %1269 = vst.msk [vmem:[%s2000_s11 + $0xac] sm:$0xf] %vm1225_vm5, %v1204_v29  ;;  %v846_v43 = vmul.f32 %v1975_v40, %v701_v39  ;;  %v862_v44 = vmul.f32 %v1975_v40, %v741_v42 }
 0x108   : > { %1285 = vst.msk [vmem:[%s2000_s11 + $0xec] sm:$0xf] %vm1225_vm5, %v1220_v30  ;;  %v945_v46 = vadd.f32 %v1980_v41, %v877_v37  ;;  %v961_v47 = vadd.f32 %v1980_v41, %v893_v38 }
 0x109   : > { %1238 = vst.msk [vmem:[%s2000_s11 + $0x30] sm:$0xf] %vm1225_vm5, %v1173_v35  ;;  %v914_v48 = vadd.f32 %v1980_v41, %v846_v43  ;;  %v930_v49 = vadd.f32 %v1980_v41, %v862_v44 }
 0x10a   : > { %1254 = vst.msk [vmem:[%s2000_s11 + $0x70] sm:$0xf] %vm1225_vm5, %v1189_v36  ;;  %vm1009_vm9 = vcmp.ge.f32.partialorder %v945_v46, 0.0  ;;  %v1077_v50 = vmul.f32 %v1987_v45, %v945_v46  ;;  %vm1025_vm10 = vcmp.ge.f32.partialorder %v961_v47, 0.0  ;;  %v1093_v51 = vmul.f32 %v1987_v45, %v961_v47 }
 0x10b   : > { %vm978_vm11 = vcmp.ge.f32.partialorder %v914_v48, 0.0  ;;  %v1046_v52 = vmul.f32 %v1987_v45, %v914_v48  ;;  %vm994_vm12 = vcmp.ge.f32.partialorder %v930_v49, 0.0  ;;  %v1062_v53 = vmul.f32 %v1987_v45, %v930_v49 }
 0x10c   : > { %v1141_v54 = vsel %vm1009_vm9, %v945_v46, %v1077_v50  ;;  %v1157_v55 = vsel %vm1025_vm10, %v961_v47, %v1093_v51 }
 0x10d   : > { %v1205_v56 = vpack.c.bf16 %v1141_v54, %v1141_v54  ;;  %v1221_v57 = vpack.c.bf16 %v1157_v55, %v1157_v55  ;;  %v1110_v58 = vsel %vm978_vm11, %v914_v48, %v1046_v52  ;;  %v1126_v59 = vsel %vm994_vm12, %v930_v49, %v1062_v53  ;;  %v781_v60 = vpop.f32.mrf.mxu2  ;;  %v821_v61 = vpop.f32.mrf.mxu3 }
 0x10e   : > { %v1174_v62 = vpack.c.bf16 %v1110_v58, %v1110_v58  ;;  %v1190_v63 = vpack.c.bf16 %v1126_v59, %v1126_v59  ;;  %v878_v0 = vmul.f32 %v1975_v40, %v781_v60  ;;  %v894_v1 = vmul.f32 %v1975_v40, %v821_v61  ;;  %v704_v2 = vpop.f32.mrf.mxu0  ;;  %v744_v3 = vpop.f32.mrf.mxu1 }
 0x10f   : > { %1270 = vst.msk [vmem:[%s2000_s11 + $0xb0] sm:$0xf] %vm1225_vm5, %v1205_v56  ;;  %v847_v4 = vmul.f32 %v1975_v40, %v704_v2  ;;  %v863_v5 = vmul.f32 %v1975_v40, %v744_v3 }
 0x110   : > { %1286 = vst.msk [vmem:[%s2000_s11 + $0xf0] sm:$0xf] %vm1225_vm5, %v1221_v57  ;;  %v946_v6 = vadd.f32 %v1980_v41, %v878_v0  ;;  %v962_v7 = vadd.f32 %v1980_v41, %v894_v1 }
 0x111   : > { %1239 = vst.msk [vmem:[%s2000_s11 + $0x34] sm:$0xf] %vm1225_vm5, %v1174_v62  ;;  %v915_v8 = vadd.f32 %v1980_v41, %v847_v4  ;;  %v931_v9 = vadd.f32 %v1980_v41, %v863_v5 }
 0x112   : > { %1255 = vst.msk [vmem:[%s2000_s11 + $0x74] sm:$0xf] %vm1225_vm5, %v1190_v63  ;;  %vm1010_vm13 = vcmp.ge.f32.partialorder %v946_v6, 0.0  ;;  %v1078_v10 = vmul.f32 %v1987_v45, %v946_v6  ;;  %vm1026_vm14 = vcmp.ge.f32.partialorder %v962_v7, 0.0  ;;  %v1094_v11 = vmul.f32 %v1987_v45, %v962_v7 }
 0x113   : > { %vm979_vm15 = vcmp.ge.f32.partialorder %v915_v8, 0.0  ;;  %v1047_v12 = vmul.f32 %v1987_v45, %v915_v8  ;;  %vm995_vm0 = vcmp.ge.f32.partialorder %v931_v9, 0.0  ;;  %v1063_v13 = vmul.f32 %v1987_v45, %v931_v9 }
 0x114   : > { %v1142_v14 = vsel %vm1010_vm13, %v946_v6, %v1078_v10  ;;  %v1158_v15 = vsel %vm1026_vm14, %v962_v7, %v1094_v11 }
 0x115   : > { %v1206_v16 = vpack.c.bf16 %v1142_v14, %v1142_v14  ;;  %v1222_v17 = vpack.c.bf16 %v1158_v15, %v1158_v15  ;;  %v1111_v18 = vsel %vm979_vm15, %v915_v8, %v1047_v12  ;;  %v1127_v19 = vsel %vm995_vm0, %v931_v9, %v1063_v13  ;;  %v784_v20 = vpop.f32.mrf.mxu2  ;;  %v824_v21 = vpop.f32.mrf.mxu3 }
 0x116   : > { %v1175_v22 = vpack.c.bf16 %v1111_v18, %v1111_v18  ;;  %v1191_v23 = vpack.c.bf16 %v1127_v19, %v1127_v19  ;;  %v879_v24 = vmul.f32 %v1975_v40, %v784_v20  ;;  %v895_v25 = vmul.f32 %v1975_v40, %v824_v21  ;;  %v706_v26 = vpop.f32.mrf.mxu0  ;;  %v746_v27 = vpop.f32.mrf.mxu1 }
 0x117   : > { %1271 = vst.msk [vmem:[%s2000_s11 + $0xb4] sm:$0xf] %vm1225_vm5, %v1206_v16  ;;  %v848_v28 = vmul.f32 %v1975_v40, %v706_v26  ;;  %v864_v29 = vmul.f32 %v1975_v40, %v746_v27 }
 0x118   : > { %1287 = vst.msk [vmem:[%s2000_s11 + $0xf4] sm:$0xf] %vm1225_vm5, %v1222_v17  ;;  %v947_v30 = vadd.f32 %v1980_v41, %v879_v24  ;;  %v963_v31 = vadd.f32 %v1980_v41, %v895_v25 }
 0x119   : > { %1240 = vst.msk [vmem:[%s2000_s11 + $0x38] sm:$0xf] %vm1225_vm5, %v1175_v22  ;;  %v916_v32 = vadd.f32 %v1980_v41, %v848_v28  ;;  %v932_v33 = vadd.f32 %v1980_v41, %v864_v29 }
 0x11a   : > { %1256 = vst.msk [vmem:[%s2000_s11 + $0x78] sm:$0xf] %vm1225_vm5, %v1191_v23  ;;  %vm1011_vm1 = vcmp.ge.f32.partialorder %v947_v30, 0.0  ;;  %v1079_v34 = vmul.f32 %v1987_v45, %v947_v30  ;;  %vm1027_vm2 = vcmp.ge.f32.partialorder %v963_v31, 0.0  ;;  %v1095_v35 = vmul.f32 %v1987_v45, %v963_v31 }
 0x11b   : > { %vm980_vm3 = vcmp.ge.f32.partialorder %v916_v32, 0.0  ;;  %v1048_v36 = vmul.f32 %v1987_v45, %v916_v32  ;;  %vm996_vm4 = vcmp.ge.f32.partialorder %v932_v33, 0.0  ;;  %v1064_v37 = vmul.f32 %v1987_v45, %v932_v33 }
 0x11c   : > { %v1143_v38 = vsel %vm1011_vm1, %v947_v30, %v1079_v34  ;;  %v1159_v39 = vsel %vm1027_vm2, %v963_v31, %v1095_v35 }
 0x11d   : > { %v1207_v42 = vpack.c.bf16 %v1143_v38, %v1143_v38  ;;  %v1223_v43 = vpack.c.bf16 %v1159_v39, %v1159_v39  ;;  %v1112_v44 = vsel %vm980_vm3, %v916_v32, %v1048_v36  ;;  %v1128_v46 = vsel %vm996_vm4, %v932_v33, %v1064_v37  ;;  %v786_v47 = vpop.f32.mrf.mxu2  ;;  %v826_v48 = vpop.f32.mrf.mxu3 }
 0x11e   : > { %v1176_v49 = vpack.c.bf16 %v1112_v44, %v1112_v44  ;;  %v1192_v50 = vpack.c.bf16 %v1128_v46, %v1128_v46  ;;  %v880_v51 = vmul.f32 %v1975_v40, %v786_v47  ;;  %v896_v52 = vmul.f32 %v1975_v40, %v826_v48 }
 0x11f   : > { %1272 = vst.msk [vmem:[%s2000_s11 + $0xb8] sm:$0xf] %vm1225_vm5, %v1207_v42 }
 0x120   : > { %1288 = vst.msk [vmem:[%s2000_s11 + $0xf8] sm:$0xf] %vm1225_vm5, %v1223_v43  ;;  %v948_v53 = vadd.f32 %v1980_v41, %v880_v51  ;;  %v964_v54 = vadd.f32 %v1980_v41, %v896_v52 }
 0x121   : > { %1241 = vst.msk [vmem:[%s2000_s11 + $0x3c] sm:$0xf] %vm1225_vm5, %v1176_v49 }
 0x122   : > { %1257 = vst.msk [vmem:[%s2000_s11 + $0x7c] sm:$0xf] %vm1225_vm5, %v1192_v50  ;;  %vm1012_vm6 = vcmp.ge.f32.partialorder %v948_v53, 0.0  ;;  %v1080_v40 = vmul.f32 %v1987_v45, %v948_v53  ;;  %vm1028_vm7 = vcmp.ge.f32.partialorder %v964_v54, 0.0  ;;  %v1096_v55 = vmul.f32 %v1987_v45, %v964_v54 }
 0x124   : > { %v1144_v56 = vsel %vm1012_vm6, %v948_v53, %v1080_v40  ;;  %v1160_v57 = vsel %vm1028_vm7, %v964_v54, %v1096_v55 }
 0x125   : > { %v1208_v58 = vpack.c.bf16 %v1144_v56, %v1144_v56  ;;  %v1224_v59 = vpack.c.bf16 %v1160_v57, %v1160_v57 }
 0x127   : > { %1273 = vst.msk [vmem:[%s2000_s11 + $0xbc] sm:$0xf] %vm1225_vm5, %v1208_v58 }
 0x128   : > { %1289 = vst.msk [vmem:[%s2000_s11 + $0xfc] sm:$0xf] %vm1225_vm5, %v1224_v59 }
 0x129   : > { %1752 = shalt.err (!%p1749_p5)
}
 0x12a   : > { %s1806_s7 = smov 64   ;;  %s1807_s11 = smov 4  }
 0x12b   : > { %1664 = dma.vmem_to_hbm [thread:$0]  (%p1878_p4), %s1306_s15, 4096, %s1308_s16, %s1291_s17, %s1806_s7, %s1806_s7, %s1807_s11  }
 0x12c PF: > { %p1670_p6 = scmp.ge.s32.totalorder %s1803_s23, 2  ;;  %s1322_s12 = sand.u32 1, %s1783_s18  }
 0x12d   : > { %s1323_s13 = scalar_lea.sflag [#allocation3], %s1322_s12 }
 0x12e   : > { %p1667_p7 = pnand %p1670_p6, %p1885_p8 }
 0x130   : > { %p1668_p9 = pneg %p1667_p7 }
 0x132   : > { %1778 = dma.done.wait (%p1668_p9), %s1323_s13, 4096  }
 0x133   : > { %1780 = vsyncadd (%p1668_p9), %s1323_s13, 4294963200  ;;  %s18_s23 = sadd.s32 1, %s1803_s23   ;;  %s2359_s18 = smov %s1787_s19 }
 0x134   : > { %p15_p10 = scmp.ge.s32.totalorder %s18_s23, 6   ;;  %s2360_s19 = smov %s1791_s20 }
 0x135   : > { %s2361_s20 = smov %s1891_s6  ;;  %s2362_s21 = smov %s1799_s22 }
 0x136   : > { %s2363_s22 = smov %s2365_s26  ;;  %17 = sbr.rel (!%p15_p10) target bundleno = 4 (0x4), region = 87 }
 0x13b   :  { %1329 = vsyncpa [#allocation3], 1 }
 0x13c   :  { %1331 = vsyncpa [#allocation3 + $0x1], 1 }

</bundles_post_ra>
